<compile_context>
chip_gen: v7x
topology: tpu7x:2x2x1
jax: 0.10.0
libtpu: 0.0.40
codegen_flags: <defaults>
</compile_context>

<pallas_src>
import functools

import numpy as np
import jax
import jax.numpy as jnp
from jax import lax
from jax.experimental import pallas as pl
from jax.experimental.pallas import tpu as pltpu


# ----------------------------------------------------------------------------
# Fused WF kernel: one grid step = (batch b, row-tile g) producing TR output rows.
# ----------------------------------------------------------------------------
def wf_kernel(x_ref, res_ref, wpre_ref, wc_ref, bias_ref, out_ref,
              fsh_ref, patch_ref, *, TR, W, Cd, Cin):
    C2 = 2 * Cd
    th = TR // 2
    g = pl.program_id(1)
    last_g = pl.num_programs(1) - 1

    # ---- 1x1 pre_conv on the parity-packed skip (block-diag weight, one matmul) ----
    res_m = res_ref[0, 0].reshape((TR + 2) * W, 2 * Cin)               # bf16
    pre = jnp.dot(res_m, wpre_ref[...], preferred_element_type=jnp.float32)
    pre = pre.reshape(TR + 2, W, C2)                                   # [even | odd] packed

    # ---- 2x bilinear upsample (align_corners=False), separable 2-tap lerp ----------
    # x_ref already carries the fw1 fusion scale and is channel-duplicated to 2*Cd.
    xt = x_ref[0, 0].astype(jnp.float32)                               # (th+2, W, 2*Cd)
    x_lo = xt[:th + 1]
    x_hi = xt[1:]
    rows_e = 0.75 * x_lo + 0.25 * x_hi                                 # local fused rows 2j
    rows_o = 0.25 * x_lo + 0.75 * x_hi                                 # local fused rows 2j+1
    xh = jnp.concatenate([rows_e[:, None], rows_o[:, None]], axis=1)
    xh = xh.reshape(TR + 2, W, C2)

    # column lerp, channel-packed: low half (even output cols) takes the left
    # neighbour, high half (odd output cols) the right neighbour (edge-clamped).
    left = jnp.concatenate([xh[:, :1], xh[:, :W - 1]], axis=1)
    right = jnp.concatenate([xh[:, 1:], xh[:, W - 1:]], axis=1)
    c_iota = lax.broadcasted_iota(jnp.int32, (TR + 2, W, C2), 2)
    nb = jnp.where(c_iota < Cd, left, right)

    # weighted fusion (fw0 / fw1 already folded into the matmul weight / x)
    fused = pre + 0.75 * xh + 0.25 * nb

    # ---- stage column-shifted fused planes in bf16 for the 3x3 conv ----------------
    # fsh column j holds [ E[j] | O[j-1] ]  (E = even fused cols, O = odd fused cols)
    fb = fused.astype(jnp.bfloat16)
    fsh_ref[:, 0:W, 0:Cd] = fb[:, :, 0:Cd]             # E[w]  -> column w
    fsh_ref[:, 1:W + 1, Cd:C2] = fb[:, :, Cd:C2]       # O[w]  -> column w+1
    # width zero-pad half-columns (tiny; rewritten every step — scratch is per-core,
    # so a "once only" init would be unsafe under megacore grid sharding)
    fsh_ref[:, W:W + 1, 0:Cd] = jnp.zeros((TR + 2, 1, Cd), jnp.bfloat16)
    fsh_ref[:, 0:1, Cd:C2] = jnp.zeros((TR + 2, 1, Cd), jnp.bfloat16)

    # height zero-pad rows, only on the image's first / last row tile
    @pl.when(g == 0)
    def _():
        fsh_ref[0:1] = jnp.zeros((1, W + 1, C2), jnp.bfloat16)

    @pl.when(g == last_g)
    def _():
        fsh_ref[TR + 1:TR + 2] = jnp.zeros((1, W + 1, C2), jnp.bfloat16)

    # ---- bf16 im2col patch: per dh only two 128-lane-aligned, unmasked writes -------
    # K layout per dh (4*Cd lanes): [ E[w] | O[w-1] | E[w+1] | O[w] ]
    for dh in range(3):
        k0 = dh * 2 * C2
        patch_ref[:, :, k0:k0 + C2] = fsh_ref[dh:dh + TR, 0:W, :]
        patch_ref[:, :, k0 + C2:k0 + 2 * C2] = fsh_ref[dh:dh + TR, 1:W + 1, :]

    # ---- 3x3 conv (+ folded BN) as ONE matmul covering both column parities ---------
    lhs = patch_ref[...].reshape(TR * W, 12 * Cd)
    y = jnp.dot(lhs, wc_ref[...], preferred_element_type=jnp.float32)
    y = jnp.clip(y + bias_ref[...], 0.0, 6.0)                          # ReLU6
    out_ref[0, 0] = y.reshape(TR, W, C2).astype(out_ref.dtype)


# ----------------------------------------------------------------------------
# Wrapper (NCHW in / NCHW out, matching the PyTorch module; eval-mode WF.forward)
# ----------------------------------------------------------------------------
def _pick_tile_rows(H2, tile_rows):
    TR = max(2, min(tile_rows, H2))
    while H2 % TR != 0 or TR % 2 != 0:
        TR -= 1
    return TR


def wf_forward(x_nchw, res_nchw, params, eps=1e-8, tile_rows=32):
    B, Cd, H, W = x_nchw.shape
    _, Cin, H2, W2 = res_nchw.shape
    assert H2 == 2 * H and W2 == 2 * W
    assert W % 8 == 0, "W (= W2 // 2) must be a multiple of 8 for tile alignment"
    C2 = 2 * Cd
    TR = _pick_tile_rows(H2, tile_rows)
    GT = H2 // TR
    th = TR // 2

    # learned fusion weights: relu + normalize, then fold into the inputs/weights
    wts = jax.nn.relu(params["fuse_w"].astype(jnp.float32))
    fw = wts / (jnp.sum(wts) + eps)

    # ---- x: NCHW -> row-haloed, channel-duplicated, fw1-scaled bf16 tiles -----------
    x_nhwc = jnp.transpose(x_nchw, (0, 2, 3, 1)).astype(jnp.float32) * fw[1]
    xrow = jnp.clip(jnp.arange(GT)[:, None] * th + jnp.arange(-1, th + 1)[None, :],
                    0, H - 1)
    x_t = x_nhwc[:, xrow]                                            # (B, GT, th+2, W, Cd)
    x_t = jnp.concatenate([x_t, x_t], axis=-1).astype(jnp.bfloat16)  # duplicate channels

    # ---- res: NCHW -> row-haloed, column-parity channel-packed bf16 tiles ----------
    res_nhwc = jnp.transpose(res_nchw, (0, 2, 3, 1)).astype(jnp.float32)
    res_pk = res_nhwc.reshape(B, H2, W, 2 * Cin)                     # channel = q*Cin + c
    rrow = jnp.clip(jnp.arange(GT)[:, None] * TR + jnp.arange(-1, TR + 1)[None, :],
                    0, H2 - 1)
    res_t = res_pk[:, rrow].astype(jnp.bfloat16)                     # (B, GT, TR+2, W, 2Cin)

    # ---- weights: 1x1 block-diag (fw0 folded) and 3x3 (BN folded, parity packed) ----
    # TODO(synk): Conv()/ConvBNReLU() are assumed bias-free 2d convs (UNetFormer style).
    wpre = params["pre_conv_w"].astype(jnp.float32) * fw[0]
    wpre2 = jnp.zeros((2 * Cin, 2 * Cd), jnp.float32)
    wpre2 = wpre2.at[:Cin, :Cd].set(wpre).at[Cin:, Cd:].set(wpre).astype(jnp.bfloat16)

    scale = params["bn_gamma"] / jnp.sqrt(params["bn_var"] + params["bn_eps"])
    w3s = params["post_conv_w"].astype(jnp.float32) * scale[None, None, None, :]
    # patch K layout per dh: [E[w] | O[w-1] | E[w+1] | O[w]]; output channels [even|odd]
    wc = jnp.zeros((3, 4, Cd, 2, Cd), jnp.float32)
    wc = wc.at[:, 0, :, 0, :].set(w3s[:, 1])   # E[w]   -> even out, kw=1
    wc = wc.at[:, 0, :, 1, :].set(w3s[:, 0])   # E[w]   -> odd  out, kw=0
    wc = wc.at[:, 1, :, 0, :].set(w3s[:, 0])   # O[w-1] -> even out, kw=0
    wc = wc.at[:, 2, :, 1, :].set(w3s[:, 2])   # E[w+1] -> odd  out, kw=2
    wc = wc.at[:, 3, :, 0, :].set(w3s[:, 2])   # O[w]   -> even out, kw=2
    wc = wc.at[:, 3, :, 1, :].set(w3s[:, 1])   # O[w]   -> odd  out, kw=1
    wc = wc.reshape(12 * Cd, 2 * Cd).astype(jnp.bfloat16)

    bias = params["bn_beta"] - params["bn_mean"] * scale
    bias2 = jnp.tile(bias, 2).reshape(1, 2 * Cd).astype(jnp.float32)

    kernel = functools.partial(wf_kernel, TR=TR, W=W, Cd=Cd, Cin=Cin)

    # ---- VMEM budget (double-buffered blocks + scratch), clamped to chip VMEM -------
    blk_bytes = ((th + 2) * W * C2 + (TR + 2) * W * 2 * Cin + TR * W * C2) * 2 \
        + (2 * Cin * 2 * Cd + 12 * Cd * 2 * Cd) * 2 + 2 * Cd * 4
    scratch_bytes = (TR + 2) * (W + 1) * C2 * 2 + TR * W * 12 * Cd * 2
    need = 2 * blk_bytes + scratch_bytes + (1 << 20)
    cap = 48 * 1024 * 1024
    try:
        cap = int(pltpu.get_tpu_info().vmem_capacity_bytes * 3 // 4)
    except Exception:
        pass
    vmem_limit = int(min(cap, max(need, 16 * 1024 * 1024)))

    flops = 2 * B * GT * ((TR + 2) * W * (2 * Cin) * (2 * Cd)
                          + TR * W * (12 * Cd) * (2 * Cd))
    bytes_accessed = (B * GT * ((th + 2) * W * C2 + (TR + 2) * W * 2 * Cin
                                + TR * W * C2)) * 2 \
        + (2 * Cin * 2 * Cd + 12 * Cd * 2 * Cd) * 2 + 2 * Cd * 4

    out = pl.pallas_call(
        kernel,
        out_shape=jax.ShapeDtypeStruct((B, GT, TR, W, C2), jnp.bfloat16),
        grid=(B, GT),
        in_specs=[
            pl.BlockSpec((1, 1, th + 2, W, C2), lambda b, g: (b, g, 0, 0, 0)),        # x tiles
            pl.BlockSpec((1, 1, TR + 2, W, 2 * Cin), lambda b, g: (b, g, 0, 0, 0)),   # res tiles
            pl.BlockSpec((2 * Cin, 2 * Cd), lambda b, g: (0, 0)),                     # 1x1 weight
            pl.BlockSpec((12 * Cd, 2 * Cd), lambda b, g: (0, 0)),                     # 3x3 weight
            pl.BlockSpec((1, 2 * Cd), lambda b, g: (0, 0)),                           # folded bias
        ],
        out_specs=pl.BlockSpec((1, 1, TR, W, C2), lambda b, g: (b, g, 0, 0, 0)),
        scratch_shapes=[
            pltpu.VMEM((TR + 2, W + 1, C2), jnp.bfloat16),    # column-shifted fused planes
            pltpu.VMEM((TR, W, 12 * Cd), jnp.bfloat16),       # bf16 im2col patch
        ],
        compiler_params=pltpu.CompilerParams(
            dimension_semantics=("parallel", "parallel"),
            vmem_limit_bytes=vmem_limit),
        cost_estimate=pl.CostEstimate(flops=int(flops), transcendentals=0,
                                      bytes_accessed=int(bytes_accessed)),
    )(x_t, res_t, wpre2, wc, bias2)

    # unpack (B, GT, TR, W, [even|odd]*Cd) -> NCHW with one XLA transpose
    out = out.reshape(B, GT, TR, W, 2, Cd)
    out = out.transpose(0, 5, 1, 2, 3, 4).reshape(B, Cd, H2, W2)
    return out


# ----------------------------------------------------------------------------
# Pure-JAX reference (eval-mode WF.forward); inputs to matmuls are rounded to
# bf16 at the same points as the kernel so the comparison can be tight.
# ----------------------------------------------------------------------------
def _bilinear_matrix(out_size, in_size):
    """F.interpolate(mode='bilinear', align_corners=False) along one axis."""
    U = np.zeros((out_size, in_size), dtype=np.float32)
    scale = in_size / out_size
    for i in range(out_size):
        src = (i + 0.5) * scale - 0.5
        i0 = int(np.floor(src))
        frac = src - i0
        j0 = min(max(i0, 0), in_size - 1)
        j1 = min(max(i0 + 1, 0), in_size - 1)
        U[i, j0] += 1.0 - frac
        U[i, j1] += frac
    return U


def _q(a):  # bf16 round-trip, mirroring the kernel's MXU / output rounding points
    return a.astype(jnp.bfloat16).astype(jnp.float32)


def wf_reference(x_nchw, res_nchw, params, eps=1e-8):
    hp = lax.Precision.HIGHEST
    wts = jax.nn.relu(params["fuse_w"].astype(jnp.float32))
    fw = wts / (jnp.sum(wts) + eps)

    x = _q(jnp.transpose(x_nchw, (0, 2, 3, 1)).astype(jnp.float32) * fw[1])
    res = _q(jnp.transpose(res_nchw, (0, 2, 3, 1)).astype(jnp.float32))
    B, H, W, Cd = x.shape
    H2, W2 = 2 * H, 2 * W
    Uh = jnp.asarray(_bilinear_matrix(H2, H))
    Uw = jnp.asarray(_bilinear_matrix(W2, W))
    x_up = jnp.einsum("ph,bhwc->bpwc", Uh, x, precision=hp)
    x_up = jnp.einsum("qw,bpwc->bpqc", Uw, x_up, precision=hp)

    pre = jnp.einsum("bhwi,io->bhwo", res,
                     _q(params["pre_conv_w"].astype(jnp.float32) * fw[0]), precision=hp)
    fused = _q(pre + x_up)

    scale = params["bn_gamma"] / jnp.sqrt(params["bn_var"] + params["bn_eps"])
    w3 = _q(params["post_conv_w"].astype(jnp.float32) * scale[None, None, None, :])
    conv = lax.conv_general_dilated(
        fused, w3, window_strides=(1, 1), padding="SAME",
        dimension_numbers=("NHWC", "HWIO", "NHWC"), precision=hp)
    bias = params["bn_beta"] - params["bn_mean"] * scale
    y = jnp.clip(conv + bias, 0.0, 6.0)
    return jnp.transpose(y, (0, 3, 1, 2))


# ----------------------------------------------------------------------------
def init_params(key, in_channels, decode_channels):
    k1, k2 = jax.random.split(key)
    return dict(
        pre_conv_w=0.05 * jax.random.normal(k1, (in_channels, decode_channels), jnp.float32),
        post_conv_w=0.05 * jax.random.normal(
            k2, (3, 3, decode_channels, decode_channels), jnp.float32),
        fuse_w=jnp.ones((2,), jnp.float32),          # nn.Parameter(torch.ones(2))
        bn_gamma=jnp.ones((decode_channels,), jnp.float32),
        bn_beta=jnp.zeros((decode_channels,), jnp.float32),
        bn_mean=jnp.zeros((decode_channels,), jnp.float32),
        bn_var=jnp.ones((decode_channels,), jnp.float32),
        bn_eps=1e-5,
    )


if __name__ == "__main__":
    B = 2
    in_channels = 128       # channels of `res` (encoder skip)
    decode_channels = 64    # channels of `x` and of the output (Decoder default)

    key = jax.random.PRNGKey(0)
    kparam, key = jax.random.split(key)
    params = init_params(kparam, in_channels, decode_channels)

    # two configs: multi-row-tile + non-square, to exercise the halo / parity logic
    for (H, W, tile_rows) in [(8, 8, 8), (16, 8, 8)]:
        key, kx, kr = jax.random.split(key, 3)
        x = jax.random.normal(kx, (B, decode_channels, H, W), jnp.float32)
        res = jax.random.normal(kr, (B, in_channels, 2 * H, 2 * W), jnp.float32)

        out = jax.block_until_ready(wf_forward(x, res, params, tile_rows=tile_rows))
        assert out.shape == (B, decode_channels, 2 * H, 2 * W)

        ref = jax.block_until_ready(wf_reference(x, res, params))
        np.testing.assert_allclose(
            np.asarray(out.astype(jnp.float32)),
            np.asarray(_q(ref)),            # kernel output is bf16 -> compare at bf16
            rtol=1e-2, atol=3.5e-2)

    print("KERNEL_OK")
</pallas_src>

<mosaic_0001>
module attributes {stable_mosaic.version = 11 : i64} {
  func.func @wf_kernel(%arg0: i32, %arg1: i32, %arg2: memref<1x1x6x8x128xbf16, #tpu.memory_space<vmem>>, %arg3: memref<1x1x10x8x256xbf16, #tpu.memory_space<vmem>>, %arg4: memref<256x128xbf16, #tpu.memory_space<vmem>>, %arg5: memref<768x128xbf16, #tpu.memory_space<vmem>>, %arg6: memref<1x128xf32, #tpu.memory_space<vmem>>, %arg7: memref<1x1x8x8x128xbf16, #tpu.memory_space<vmem>>, %arg8: memref<10x9x128xbf16, #tpu.memory_space<vmem>>, %arg9: memref<8x8x768xbf16, #tpu.memory_space<vmem>>) attributes {dimension_semantics = [#tpu.dimension_semantics<parallel>, #tpu.dimension_semantics<parallel>], iteration_bounds = array<i64: 2, 2>, scalar_prefetch = 0 : i64, scratch_operands = 2 : i64, tpu.core_type = #tpu.core_type<tc>, window_params = [{transform_indices = @transform_0, window_bounds = array<i64: 1, 1, 6, 8, 128>}, {transform_indices = @transform_1, window_bounds = array<i64: 1, 1, 10, 8, 256>}, {pipeline_mode = #tpu.pipeline_mode<synchronous>, transform_indices = @transform_2, window_bounds = array<i64: 256, 128>}, {pipeline_mode = #tpu.pipeline_mode<synchronous>, transform_indices = @transform_3, window_bounds = array<i64: 768, 128>}, {pipeline_mode = #tpu.pipeline_mode<synchronous>, transform_indices = @transform_4, window_bounds = array<i64: 1, 128>}, {transform_indices = @transform_5, window_bounds = array<i64: 1, 1, 8, 8, 128>}]} {
    %c0 = arith.constant 0 : index
    %c0_0 = arith.constant 0 : index
    %c0_1 = arith.constant 0 : index
    %c0_2 = arith.constant 0 : index
    %c0_3 = arith.constant 0 : index
    %0 = vector.load %arg3[%c0, %c0_0, %c0_1, %c0_2, %c0_3] : memref<1x1x10x8x256xbf16, #tpu.memory_space<vmem>>, vector<1x1x10x8x256xbf16>
    %1 = vector.shape_cast %0 : vector<1x1x10x8x256xbf16> to vector<10x8x256xbf16>
    %2 = vector.shape_cast %1 : vector<10x8x256xbf16> to vector<80x256xbf16>
    %c0_4 = arith.constant 0 : index
    %c0_5 = arith.constant 0 : index
    %3 = vector.load %arg4[%c0_4, %c0_5] : memref<256x128xbf16, #tpu.memory_space<vmem>>, vector<256x128xbf16>
    %cst = arith.constant dense<0.000000e+00> : vector<80x128xf32>
    %4 = tpu.matmul %2, %3, %cst {dimension_numbers = #tpu.dot_dimension_numbers<[1], [0], [0], [1], [0, 0, 1, 1], [], []>} : vector<80x256xbf16>, vector<256x128xbf16>, vector<80x128xf32> -> vector<80x128xf32>
    %5 = vector.shape_cast %4 : vector<80x128xf32> to vector<10x8x128xf32>
    %c0_6 = arith.constant 0 : index
    %c0_7 = arith.constant 0 : index
    %c0_8 = arith.constant 0 : index
    %c0_9 = arith.constant 0 : index
    %c0_10 = arith.constant 0 : index
    %6 = vector.load %arg2[%c0_6, %c0_7, %c0_8, %c0_9, %c0_10] : memref<1x1x6x8x128xbf16, #tpu.memory_space<vmem>>, vector<1x1x6x8x128xbf16>
    %7 = vector.shape_cast %6 : vector<1x1x6x8x128xbf16> to vector<6x8x128xbf16>
    %8 = arith.extf %7 : vector<6x8x128xbf16> to vector<6x8x128xf32>
    %9 = vector.extract_strided_slice %8 {offsets = [0, 0, 0], sizes = [5, 8, 128], strides = [1, 1, 1]} : vector<6x8x128xf32> to vector<5x8x128xf32>
    %10 = vector.extract_strided_slice %8 {offsets = [1, 0, 0], sizes = [5, 8, 128], strides = [1, 1, 1]} : vector<6x8x128xf32> to vector<5x8x128xf32>
    %cst_11 = arith.constant 7.500000e-01 : f32
    %11 = vector.broadcast %cst_11 : f32 to vector<5x8x128xf32>
    %12 = arith.mulf %11, %9 : vector<5x8x128xf32>
    %cst_12 = arith.constant 2.500000e-01 : f32
    %13 = vector.broadcast %cst_12 : f32 to vector<5x8x128xf32>
    %14 = arith.mulf %13, %10 : vector<5x8x128xf32>
    %15 = arith.addf %12, %14 : vector<5x8x128xf32>
    %cst_13 = arith.constant 2.500000e-01 : f32
    %16 = vector.broadcast %cst_13 : f32 to vector<5x8x128xf32>
    %17 = arith.mulf %16, %9 : vector<5x8x128xf32>
    %cst_14 = arith.constant 7.500000e-01 : f32
    %18 = vector.broadcast %cst_14 : f32 to vector<5x8x128xf32>
    %19 = arith.mulf %18, %10 : vector<5x8x128xf32>
    %20 = arith.addf %17, %19 : vector<5x8x128xf32>
    %21 = vector.shape_cast %15 : vector<5x8x128xf32> to vector<5x1x8x128xf32>
    %22 = vector.shape_cast %20 : vector<5x8x128xf32> to vector<5x1x8x128xf32>
    %23 = tpu.concatenate %21, %22 in 1 : vector<5x1x8x128xf32>, vector<5x1x8x128xf32> -> vector<5x2x8x128xf32>
    %24 = vector.shape_cast %23 : vector<5x2x8x128xf32> to vector<10x8x128xf32>
    %25 = vector.extract_strided_slice %24 {offsets = [0, 0, 0], sizes = [10, 1, 128], strides = [1, 1, 1]} : vector<10x8x128xf32> to vector<10x1x128xf32>
    %26 = vector.extract_strided_slice %24 {offsets = [0, 0, 0], sizes = [10, 7, 128], strides = [1, 1, 1]} : vector<10x8x128xf32> to vector<10x7x128xf32>
    %27 = tpu.concatenate %25, %26 in 1 : vector<10x1x128xf32>, vector<10x7x128xf32> -> vector<10x8x128xf32>
    %28 = vector.extract_strided_slice %24 {offsets = [0, 1, 0], sizes = [10, 7, 128], strides = [1, 1, 1]} : vector<10x8x128xf32> to vector<10x7x128xf32>
    %29 = vector.extract_strided_slice %24 {offsets = [0, 7, 0], sizes = [10, 1, 128], strides = [1, 1, 1]} : vector<10x8x128xf32> to vector<10x1x128xf32>
    %30 = tpu.concatenate %28, %29 in 1 : vector<10x7x128xf32>, vector<10x1x128xf32> -> vector<10x8x128xf32>
    %31 = tpu.iota {dimensions = array<i32: 2>} : vector<10x8x128xi32>
    %c64_i32 = arith.constant 64 : i32
    %32 = vector.broadcast %c64_i32 : i32 to vector<10x8x128xi32>
    %33 = arith.cmpi slt, %31, %32 : vector<10x8x128xi32>
    %34 = arith.select %33, %27, %30 : vector<10x8x128xi1>, vector<10x8x128xf32>
    %cst_15 = arith.constant 7.500000e-01 : f32
    %35 = vector.broadcast %cst_15 : f32 to vector<10x8x128xf32>
    %36 = arith.mulf %35, %24 : vector<10x8x128xf32>
    %37 = arith.addf %5, %36 : vector<10x8x128xf32>
    %cst_16 = arith.constant 2.500000e-01 : f32
    %38 = vector.broadcast %cst_16 : f32 to vector<10x8x128xf32>
    %39 = arith.mulf %38, %34 : vector<10x8x128xf32>
    %40 = arith.addf %37, %39 : vector<10x8x128xf32>
    %41 = arith.truncf %40 : vector<10x8x128xf32> to vector<10x8x128xbf16>
    %42 = vector.extract_strided_slice %41 {offsets = [0, 0, 0], sizes = [10, 8, 64], strides = [1, 1, 1]} : vector<10x8x128xbf16> to vector<10x8x64xbf16>
    %c0_17 = arith.constant 0 : index
    %c0_18 = arith.constant 0 : index
    %c0_19 = arith.constant 0 : index
    %43 = vector.load %arg8[%c0_17, %c0_18, %c0_19] : memref<10x9x128xbf16, #tpu.memory_space<vmem>>, vector<10x8x64xbf16>
    tpu.vector_store %arg8[%c0_17, %c0_18, %c0_19], %42 {strides = array<i32>} : memref<10x9x128xbf16, #tpu.memory_space<vmem>>, vector<10x8x64xbf16>,
    %44 = vector.extract_strided_slice %41 {offsets = [0, 0, 64], sizes = [10, 8, 64], strides = [1, 1, 1]} : vector<10x8x128xbf16> to vector<10x8x64xbf16>
    %c0_20 = arith.constant 0 : index
    %c1 = arith.constant 1 : index
    %c64 = arith.constant 64 : index
    %45 = vector.load %arg8[%c0_20, %c1, %c64] : memref<10x9x128xbf16, #tpu.memory_space<vmem>>, vector<10x8x64xbf16>
    tpu.vector_store %arg8[%c0_20, %c1, %c64], %44 {strides = array<i32>} : memref<10x9x128xbf16, #tpu.memory_space<vmem>>, vector<10x8x64xbf16>,
    %cst_21 = arith.constant 0.000000e+00 : bf16
    %46 = vector.broadcast %cst_21 : bf16 to vector<10x1x64xbf16>
    %c0_22 = arith.constant 0 : index
    %c8 = arith.constant 8 : index
    %c0_23 = arith.constant 0 : index
    %47 = vector.load %arg8[%c0_22, %c8, %c0_23] : memref<10x9x128xbf16, #tpu.memory_space<vmem>>, vector<10x1x64xbf16>
    tpu.vector_store %arg8[%c0_22, %c8, %c0_23], %46 {strides = array<i32>} : memref<10x9x128xbf16, #tpu.memory_space<vmem>>, vector<10x1x64xbf16>,
    %cst_24 = arith.constant 0.000000e+00 : bf16
    %48 = vector.broadcast %cst_24 : bf16 to vector<10x1x64xbf16>
    %c0_25 = arith.constant 0 : index
    %c0_26 = arith.constant 0 : index
    %c64_27 = arith.constant 64 : index
    %49 = vector.load %arg8[%c0_25, %c0_26, %c64_27] : memref<10x9x128xbf16, #tpu.memory_space<vmem>>, vector<10x1x64xbf16>
    tpu.vector_store %arg8[%c0_25, %c0_26, %c64_27], %48 {strides = array<i32>} : memref<10x9x128xbf16, #tpu.memory_space<vmem>>, vector<10x1x64xbf16>,
    %c0_i32 = arith.constant 0 : i32
    %50 = arith.cmpi eq, %arg1, %c0_i32 : i32
    %51 = arith.extui %50 : i1 to i32
    %c0_i32_28 = arith.constant 0 : i32
    %52 = arith.cmpi ne, %51, %c0_i32_28 : i32
    scf.if %52 {
      %cst_75 = arith.constant 0.000000e+00 : bf16
      %84 = vector.broadcast %cst_75 : bf16 to vector<1x9x128xbf16>
      %c0_76 = arith.constant 0 : index
      %c0_77 = arith.constant 0 : index
      %c0_78 = arith.constant 0 : index
      %85 = vector.load %arg8[%c0_76, %c0_77, %c0_78] : memref<10x9x128xbf16, #tpu.memory_space<vmem>>, vector<1x9x128xbf16>
      tpu.vector_store %arg8[%c0_76, %c0_77, %c0_78], %84 {strides = array<i32>} : memref<10x9x128xbf16, #tpu.memory_space<vmem>>, vector<1x9x128xbf16>,
    } else {
    }
    %c1_i32 = arith.constant 1 : i32
    %53 = arith.cmpi eq, %arg1, %c1_i32 : i32
    %54 = arith.extui %53 : i1 to i32
    %c0_i32_29 = arith.constant 0 : i32
    %55 = arith.cmpi ne, %54, %c0_i32_29 : i32
    scf.if %55 {
      %cst_75 = arith.constant 0.000000e+00 : bf16
      %84 = vector.broadcast %cst_75 : bf16 to vector<1x9x128xbf16>
      %c9 = arith.constant 9 : index
      %c0_76 = arith.constant 0 : index
      %c0_77 = arith.constant 0 : index
      %85 = vector.load %arg8[%c9, %c0_76, %c0_77] : memref<10x9x128xbf16, #tpu.memory_space<vmem>>, vector<1x9x128xbf16>
      tpu.vector_store %arg8[%c9, %c0_76, %c0_77], %84 {strides = array<i32>} : memref<10x9x128xbf16, #tpu.memory_space<vmem>>, vector<1x9x128xbf16>,
    } else {
    }
    %c0_30 = arith.constant 0 : index
    %c0_31 = arith.constant 0 : index
    %c0_32 = arith.constant 0 : index
    %56 = vector.load %arg8[%c0_30, %c0_31, %c0_32] : memref<10x9x128xbf16, #tpu.memory_space<vmem>>, vector<8x8x128xbf16>
    %c0_33 = arith.constant 0 : index
    %c0_34 = arith.constant 0 : index
    %c0_35 = arith.constant 0 : index
    %57 = vector.load %arg9[%c0_33, %c0_34, %c0_35] : memref<8x8x768xbf16, #tpu.memory_space<vmem>>, vector<8x8x128xbf16>
    tpu.vector_store %arg9[%c0_33, %c0_34, %c0_35], %56 {strides = array<i32>} : memref<8x8x768xbf16, #tpu.memory_space<vmem>>, vector<8x8x128xbf16>,
    %c0_36 = arith.constant 0 : index
    %c1_37 = arith.constant 1 : index
    %c0_38 = arith.constant 0 : index
    %58 = vector.load %arg8[%c0_36, %c1_37, %c0_38] : memref<10x9x128xbf16, #tpu.memory_space<vmem>>, vector<8x8x128xbf16>
    %c0_39 = arith.constant 0 : index
    %c0_40 = arith.constant 0 : index
    %c128 = arith.constant 128 : index
    %59 = vector.load %arg9[%c0_39, %c0_40, %c128] : memref<8x8x768xbf16, #tpu.memory_space<vmem>>, vector<8x8x128xbf16>
    tpu.vector_store %arg9[%c0_39, %c0_40, %c128], %58 {strides = array<i32>} : memref<8x8x768xbf16, #tpu.memory_space<vmem>>, vector<8x8x128xbf16>,
    %c1_41 = arith.constant 1 : index
    %c0_42 = arith.constant 0 : index
    %c0_43 = arith.constant 0 : index
    %60 = vector.load %arg8[%c1_41, %c0_42, %c0_43] : memref<10x9x128xbf16, #tpu.memory_space<vmem>>, vector<8x8x128xbf16>
    %c0_44 = arith.constant 0 : index
    %c0_45 = arith.constant 0 : index
    %c256 = arith.constant 256 : index
    %61 = vector.load %arg9[%c0_44, %c0_45, %c256] : memref<8x8x768xbf16, #tpu.memory_space<vmem>>, vector<8x8x128xbf16>
    tpu.vector_store %arg9[%c0_44, %c0_45, %c256], %60 {strides = array<i32>} : memref<8x8x768xbf16, #tpu.memory_space<vmem>>, vector<8x8x128xbf16>,
    %c1_46 = arith.constant 1 : index
    %c1_47 = arith.constant 1 : index
    %c0_48 = arith.constant 0 : index
    %62 = vector.load %arg8[%c1_46, %c1_47, %c0_48] : memref<10x9x128xbf16, #tpu.memory_space<vmem>>, vector<8x8x128xbf16>
    %c0_49 = arith.constant 0 : index
    %c0_50 = arith.constant 0 : index
    %c384 = arith.constant 384 : index
    %63 = vector.load %arg9[%c0_49, %c0_50, %c384] : memref<8x8x768xbf16, #tpu.memory_space<vmem>>, vector<8x8x128xbf16>
    tpu.vector_store %arg9[%c0_49, %c0_50, %c384], %62 {strides = array<i32>} : memref<8x8x768xbf16, #tpu.memory_space<vmem>>, vector<8x8x128xbf16>,
    %c2 = arith.constant 2 : index
    %c0_51 = arith.constant 0 : index
    %c0_52 = arith.constant 0 : index
    %64 = vector.load %arg8[%c2, %c0_51, %c0_52] : memref<10x9x128xbf16, #tpu.memory_space<vmem>>, vector<8x8x128xbf16>
    %c0_53 = arith.constant 0 : index
    %c0_54 = arith.constant 0 : index
    %c512 = arith.constant 512 : index
    %65 = vector.load %arg9[%c0_53, %c0_54, %c512] : memref<8x8x768xbf16, #tpu.memory_space<vmem>>, vector<8x8x128xbf16>
    tpu.vector_store %arg9[%c0_53, %c0_54, %c512], %64 {strides = array<i32>} : memref<8x8x768xbf16, #tpu.memory_space<vmem>>, vector<8x8x128xbf16>,
    %c2_55 = arith.constant 2 : index
    %c1_56 = arith.constant 1 : index
    %c0_57 = arith.constant 0 : index
    %66 = vector.load %arg8[%c2_55, %c1_56, %c0_57] : memref<10x9x128xbf16, #tpu.memory_space<vmem>>, vector<8x8x128xbf16>
    %c0_58 = arith.constant 0 : index
    %c0_59 = arith.constant 0 : index
    %c640 = arith.constant 640 : index
    %67 = vector.load %arg9[%c0_58, %c0_59, %c640] : memref<8x8x768xbf16, #tpu.memory_space<vmem>>, vector<8x8x128xbf16>
    tpu.vector_store %arg9[%c0_58, %c0_59, %c640], %66 {strides = array<i32>} : memref<8x8x768xbf16, #tpu.memory_space<vmem>>, vector<8x8x128xbf16>,
    %c0_60 = arith.constant 0 : index
    %c0_61 = arith.constant 0 : index
    %c0_62 = arith.constant 0 : index
    %68 = vector.load %arg9[%c0_60, %c0_61, %c0_62] : memref<8x8x768xbf16, #tpu.memory_space<vmem>>, vector<8x8x768xbf16>
    %69 = vector.shape_cast %68 : vector<8x8x768xbf16> to vector<64x768xbf16>
    %c0_63 = arith.constant 0 : index
    %c0_64 = arith.constant 0 : index
    %70 = vector.load %arg5[%c0_63, %c0_64] : memref<768x128xbf16, #tpu.memory_space<vmem>>, vector<768x128xbf16>
    %cst_65 = arith.constant dense<0.000000e+00> : vector<64x128xf32>
    %71 = tpu.matmul %69, %70, %cst_65 {dimension_numbers = #tpu.dot_dimension_numbers<[1], [0], [0], [1], [0, 0, 1, 1], [], []>} : vector<64x768xbf16>, vector<768x128xbf16>, vector<64x128xf32> -> vector<64x128xf32>
    %c0_66 = arith.constant 0 : index
    %c0_67 = arith.constant 0 : index
    %72 = vector.load %arg6[%c0_66, %c0_67] : memref<1x128xf32, #tpu.memory_space<vmem>>, vector<1x128xf32>
    %73 = vector.broadcast %72 : vector<1x128xf32> to vector<64x128xf32>
    %74 = arith.addf %71, %73 : vector<64x128xf32>
    %cst_68 = arith.constant 0.000000e+00 : f32
    %cst_69 = arith.constant 6.000000e+00 : f32
    %75 = vector.broadcast %cst_68 : f32 to vector<64x128xf32>
    %76 = arith.maximumf %75, %74 : vector<64x128xf32>
    %77 = vector.broadcast %cst_69 : f32 to vector<64x128xf32>
    %78 = arith.minimumf %77, %76 : vector<64x128xf32>
    %79 = vector.shape_cast %78 : vector<64x128xf32> to vector<8x8x128xf32>
    %80 = arith.truncf %79 : vector<8x8x128xf32> to vector<8x8x128xbf16>
    %c0_70 = arith.constant 0 : index
    %c0_71 = arith.constant 0 : index
    %c0_72 = arith.constant 0 : index
    %c0_73 = arith.constant 0 : index
    %c0_74 = arith.constant 0 : index
    %81 = vector.load %arg7[%c0_70, %c0_71, %c0_72, %c0_73, %c0_74] : memref<1x1x8x8x128xbf16, #tpu.memory_space<vmem>>, vector<1x1x8x8x128xbf16>
    %82 = vector.shape_cast %81 : vector<1x1x8x8x128xbf16> to vector<8x8x128xbf16>
    %83 = vector.shape_cast %80 : vector<8x8x128xbf16> to vector<1x1x8x8x128xbf16>
    tpu.vector_store %arg7[%c0_70, %c0_71, %c0_72, %c0_73, %c0_74], %83 {strides = array<i32>} : memref<1x1x8x8x128xbf16, #tpu.memory_space<vmem>>, vector<1x1x8x8x128xbf16>,
    return
  }
  func.func @transform_0(%arg0: i32, %arg1: i32) -> (i32, i32, i32, i32, i32) {
    %c0_i32 = arith.constant 0 : i32
    %c0_i32_0 = arith.constant 0 : i32
    %c0_i32_1 = arith.constant 0 : i32
    %c0_i32_2 = arith.constant 0 : i32
    return %arg0, %arg1, %c0_i32, %c0_i32_0, %c0_i32_1 : i32, i32, i32, i32, i32
  }
  func.func @transform_1(%arg0: i32, %arg1: i32) -> (i32, i32, i32, i32, i32) {
    %c0_i32 = arith.constant 0 : i32
    %c0_i32_0 = arith.constant 0 : i32
    %c0_i32_1 = arith.constant 0 : i32
    %c0_i32_2 = arith.constant 0 : i32
    return %arg0, %arg1, %c0_i32, %c0_i32_0, %c0_i32_1 : i32, i32, i32, i32, i32
  }
  func.func @transform_2(%arg0: i32, %arg1: i32) -> (i32, i32) {
    %c0_i32 = arith.constant 0 : i32
    %c0_i32_0 = arith.constant 0 : i32
    %c0_i32_1 = arith.constant 0 : i32
    return %c0_i32, %c0_i32_0 : i32, i32
  }
  func.func @transform_3(%arg0: i32, %arg1: i32) -> (i32, i32) {
    %c0_i32 = arith.constant 0 : i32
    %c0_i32_0 = arith.constant 0 : i32
    %c0_i32_1 = arith.constant 0 : i32
    return %c0_i32, %c0_i32_0 : i32, i32
  }
  func.func @transform_4(%arg0: i32, %arg1: i32) -> (i32, i32) {
    %c0_i32 = arith.constant 0 : i32
    %c0_i32_0 = arith.constant 0 : i32
    %c0_i32_1 = arith.constant 0 : i32
    return %c0_i32, %c0_i32_0 : i32, i32
  }
  func.func @transform_5(%arg0: i32, %arg1: i32) -> (i32, i32, i32, i32, i32) {
    %c0_i32 = arith.constant 0 : i32
    %c0_i32_0 = arith.constant 0 : i32
    %c0_i32_1 = arith.constant 0 : i32
    %c0_i32_2 = arith.constant 0 : i32
    return %arg0, %arg1, %c0_i32, %c0_i32_0, %c0_i32_1 : i32, i32, i32, i32, i32
  }
}

</mosaic_0001>

<bundles_post_ra>
// kernel: tpu_custom_call.1
= control target key start
LH: loop header
LB: loop body
LE: loop exit
PB: predicated region body
PF: predicated region fallthrough
CT: control target
= control target key end

     0   :  { %s3942_s0 = inlined_call_operand.hbm [shape: bf16[2,2,6,8,128], index: 0, kind: input, shape index: {}]   ;;  %s3943_s1 = inlined_call_operand.hbm [shape: bf16[2,2,10,8,256], index: 1, kind: input, shape index: {}]   ;;  %s3944_s2 = inlined_call_operand.hbm [shape: bf16[256,128], index: 2, kind: input, shape index: {}]   ;;  %s3945_s3 = inlined_call_operand.hbm [shape: bf16[768,128], index: 3, kind: input, shape index: {}]   ;;  %s3946_s4 = inlined_call_operand.vmem [shape: f32[1,128], index: 4, kind: input, shape index: {}]   ;;  %s3947_s5 = inlined_call_operand.hbm [shape: bf16[2,2,8,8,128], index: 5, kind: output, shape index: {}]  }
   0x1   :  { %3958 = sst [smem:[#allocation23_spill]] %s3942_s0 }
   0x2   :  { %3959 = sst [smem:[#allocation24_spill]] %s3944_s2 }
   0x3   :  { %3960 = sst [smem:[#allocation25_spill]] %s3945_s3 }
   0x4   :  { %3961 = sst [smem:[#allocation26_spill]] %s3947_s5 }
   0x5   :  { %10 = vsyncpa [#allocation5], 0 }
   0x6   :  { %12 = vsyncpa [#allocation5 + $0x1], 0 }
   0x7   :  { %13 = vsyncpa [#allocation8], 0 }
   0x8   :  { %15 = vsyncpa [#allocation8 + $0x1], 0 }
   0x9   :  { %16 = vsyncpa [#allocation11], 0 }
   0xa   :  { %17 = vsyncpa [#allocation6], 0 }
   0xb   :  { %19 = vsyncpa [#allocation6 + $0x1], 0  ;;  %s3301_s18 = smov 0   ;;  %s3303_s19 = smov 0  }
   0xc   :  { %s3305_s20 = smov 0   ;;  %s3307_s21 = smov 0  }
   0xd   :  { %s3309_s22 = smov 0   ;;  %s3311_s23 = smov 0  }
   0xe   :  { %s3313_s24 = smov 0   ;;  %s3315_s25 = smov 0  }
   0xf LB: > { %3962 = sst [smem:[#allocation18_spill]] %s3228_s18  ;;  %s3342_s26 = sadd.s32 4294967295, %s3256_s25   ;;  %s3256_s25 = sphi %s3315_s25, %s25_s25   ;;  %s3252_s24 = sphi %s3313_s24, %s4009_s24   ;;  %s3248_s23 = sphi %s3311_s23, %s4008_s23   ;;  %s3244_s22 = sphi %s3309_s22, %s4007_s22   ;;  %s3240_s21 = sphi %s3307_s21, %s4006_s21   ;;  %s3236_s20 = sphi %s3305_s20, %s4005_s20   ;;  %s3232_s19 = sphi %s3303_s19, %s4004_s19   ;;  %s3228_s18 = sphi %s3301_s18, %s4003_s18  }
  0x10   : > { %s2454_s27 = sadd.s32 4294967294, %s3256_s25   ;;  %p59_p0 = scmp.ne.s32.totalorder %s3232_s19, %s3228_s18 }
  0x11   : > { %p3948_p1 = scmp.eq.s32.totalorder %s3342_s26, 0  ;;  %p182_p3 = scmp.eq.s32.totalorder %s2454_s27, 3 }
  0x12   : > { %p2455_p5 = scmp.ge.s32.totalorder %s3256_s25, 1  ;;  %p189_p7 = scmp.lt.s32.totalorder %s3256_s25, 5 }
  0x13   : > { %p3351_p4 = por %p3948_p1, %p59_p0  ;;  %p3356_p6 = por %p182_p3, %p59_p0 }
  0x14   : > { %p3361_p8 = pnand %p2455_p5, %p189_p7  ;;  %s3258_s6 = smov [#allocation9]  }
  0x15   : > { %s3963_s28 = scalar_select %p3351_p4, 1, 0 }
  0x16   : > { %s3964_s29 = scalar_select %p3356_p6, 1, 0 }
  0x17   : > { %s3966_s30 = scalar_select %p3361_p8, 1, 0 }
  0x18   : > { %3965 = sst [smem:[#allocation19_spill]] %s3964_s29  ;;  %s201_s7 = sshll.u32 %s3258_s6, 4  ;;  %s202_s7 = int_to_ptr.vmem [resolvable:$true] %s201_s7 }
  0x19   : > { %p2817_p9 = pneg %p3361_p8  ;;  %s3259_s9 = smov [#allocation10]  }
  0x1a   : > { %s214_s10 = sshll.u32 %s3259_s9, 4  ;;  %s3968_s2 = sld [smem:[#allocation24_spill]]  ;;  %s3373_s10 = int_to_ptr.vmem [resolvable:$true] %s214_s10 }
  0x1b   : > { %p3369_p10 = pnand %p2817_p9, %p3948_p1 }
  0x1d   : > { %p3032_p12 = pneg %p3369_p10 }
  0x20   : > { %s3030_s13 = scalar_lea.hbm %s3968_s2, 2048 }
  0x21   : > { %p3031_p11 = scmp.ne.s32.totalorder %s3968_s2, %s3030_s13  ;;  %p3037_p3 = scmp.lt.u32.totalorder %s3030_s13, %s3968_s2 }
  0x23   : > { %p3033_p13 = pnand %p3032_p12, %p3031_p11 }
  0x25   : > { %p3034_p0 = pneg %p3033_p13 }
  0x27   : > { %p3039_p5 = pnand %p3037_p3, %p3034_p0 }
  0x29   : > { %3042 = shalt.err (!%p3039_p5)
}
  0x2a   : > { %s3043_s27 = scalar_lea.vmem %s202_s7, 2048  ;;  %p3051_p2 = scmp.lt.s32.totalorder %s202_s7, %s202_s7 }
  0x2b   : > { %p3044_p7 = scmp.ne.s32.totalorder %s202_s7, %s3043_s27  ;;  %p3052_p6 = scmp.lt.s32.totalorder %s3043_s27, %s3043_s27 }
  0x2d   : > { %p3046_p9 = pnand %p3044_p7, %p3032_p12  ;;  %p3053_p4 = por %p3052_p6, %p3051_p2 }
  0x2f   : > { %p3047_p1 = pneg %p3046_p9 }
  0x31   : > { %p3054_p8 = pnand %p3053_p4, %p3047_p1 }
  0x33   : > { %3057 = shalt.err (!%p3054_p8)
}
  0x34   : > { %s3952_s6 = smov 64   ;;  %s3953_s9 = smov 4  }
  0x35   : > { %2820 = dma.hbm_to_vmem [thread:$0]  (!%p3369_p10), %s3968_s2, 2048, %s202_s7, [#allocation8], %s3952_s6, %s3952_s6, %s3953_s9  }
  0x36   : > { %s3969_s3 = sld [smem:[#allocation25_spill]] }
  0x3c   : > { %s3058_s15 = scalar_lea.hbm %s3969_s3, 6144 }
  0x3d   : > { %p3059_p1 = scmp.ne.s32.totalorder %s3969_s3, %s3058_s15  ;;  %p3065_p6 = scmp.lt.u32.totalorder %s3058_s15, %s3969_s3 }
  0x3f   : > { %p3061_p2 = pnand %p3059_p1, %p3032_p12 }
  0x41   : > { %p3062_p4 = pneg %p3061_p2 }
  0x43   : > { %p3067_p8 = pnand %p3065_p6, %p3062_p4 }
  0x45   : > { %3070 = shalt.err (!%p3067_p8)
}
  0x46   : > { %s3071_s7 = scalar_lea.vmem %s3373_s10, 6144  ;;  %p3079_p3 = scmp.lt.s32.totalorder %s3373_s10, %s3373_s10 }
  0x47   : > { %p3072_p11 = scmp.ne.s32.totalorder %s3373_s10, %s3071_s7  ;;  %p3080_p5 = scmp.lt.s32.totalorder %s3071_s7, %s3071_s7 }
  0x49   : > { %p3074_p13 = pnand %p3072_p11, %p3032_p12  ;;  %p3081_p7 = por %p3080_p5, %p3079_p3 }
  0x4b   : > { %p3075_p0 = pneg %p3074_p13 }
  0x4d   : > { %p3082_p9 = pnand %p3081_p7, %p3075_p0 }
  0x4f   : > { %3085 = shalt.err (!%p3082_p9)
}
  0x50   : > { %2823 = dma.hbm_to_vmem [thread:$0]  (!%p3369_p10), %s3969_s3, 6144, %s3373_s10, [#allocation11], %s3952_s6, %s3952_s6, %s3953_s9  }
  0x51   : > { %s34_s8 = sadd.s32 1, %s3248_s23  ;;  %s37_s12 = sadd.s32 1, %s3252_s24 }
  0x52   : > { %p35_p12 = scmp.ge.s32.totalorder %s34_s8, 2  ;;  %s46_s13 = sadd.s32 1, %s3236_s20 }
  0x53   : > { %p53_p1 = scmp.ne.s32.totalorder %s3236_s20, %s3232_s19  ;;  %p54_p2 = scmp.eq.s32.totalorder %s3256_s25, 0 }
  0x54   : > { %s4011_s8 = smov (%p35_p12, %s34_s8), 0  ;;  %s4013_s12 = smov (!%p35_p12, %s37_s12), %s3252_s24 }
  0x55   : > { %3970 = sst [smem:[#allocation20_spill]] %s4011_s8  ;;  %s42_s14 = ssub.s32 %s3248_s23, %s4011_s8 }
  0x56   : > { %p3439_p4 = por %p54_p2, %p53_p1  ;;  %p39_p10 = scmp.ge.s32.totalorder %s4013_s12, 2 }
  0x57   : > { %p3972_p6 = scmp.eq.s32.totalorder %s3342_s26, 3  ;;  %p2837_p11 = scmp.lt.s32.totalorder %s3256_s25, 4 }
  0x58   : > { %s3451_s16 = sand.u32 1, %s3236_s20   ;;  %s4015_s12 = smov (%p39_p10, %s4013_s12), 0 }
  0x59   : > { %p3445_p8 = por %p3972_p6, %p53_p1  ;;  %3974 = sst [smem:[#allocation21_spill]] %s4015_s12 }
  0x5a   : > { %s2795_s17 = smul.u32 24, %s3451_s16  ;;  %s41_s27 = ssub.s32 %s3252_s24, %s4015_s12 }
  0x5b   : > { %s2796_s7 = smul.u32 6, %s3248_s23  ;;  %s43_s29 = sor.u32 %s42_s14, %s41_s27 }
  0x5c   : > { %p44_p13 = scmp.eq.s32.totalorder %s43_s29, 0  ;;  %s2797_s11 = smul.u32 12, %s3252_s24 }
  0x5d   : > { %s235_s6 = scalar_lea.vmem [#allocation4], %s2795_s17  ;;  %p3462_p0 = pnand %p2837_p11, %p3439_p4 }
  0x5e   : > { %s244_s9 = sshll.u32 %s235_s6, 4  ;;  %s241_s8 = sadd.s32 %s2797_s11, %s2796_s7  ;;  %s3469_s9 = int_to_ptr.vmem [resolvable:$true] %s244_s9 }
  0x5f   : > { %s3467_s3 = scalar_select %p44_p13, %s3236_s20, %s46_s13  }
  0x60   : > { %s2459_s18 = sshll.u32 %s241_s8, 6  ;;  %s3977_s0 = sld [smem:[#allocation23_spill]] }
  0x61   : > { %3976 = sst [smem:[#allocation22_spill]] %s3467_s3  ;;  %s232_s15 = scalar_lea.sflag [#allocation5], %s3451_s16 }
  0x62   : > { %p3088_p5 = pneg %p3462_p0 }
  0x66   : > { %s3474_s14 = scalar_lea.hbm %s3977_s0, %s2459_s18  ;;  %s3091_s5 = scalar_lea.hbm %s3977_s0, 1536 }
  0x67   : > { %s3086_s17 = scalar_lea.hbm %s3474_s14, 384  ;;  %p3092_p12 = scmp.lt.u32.totalorder %s3474_s14, %s3977_s0 }
  0x68   : > { %p3087_p3 = scmp.ne.s32.totalorder %s3474_s14, %s3086_s17  ;;  %p3093_p1 = scmp.lt.u32.totalorder %s3091_s5, %s3086_s17 }
  0x69   : > { %p3095_p4 = scmp.lt.u32.totalorder %s3086_s17, %s3474_s14 }
  0x6a   : > { %p3089_p7 = pnand %p3088_p5, %p3087_p3  ;;  %p3094_p2 = por %p3093_p1, %p3092_p12 }
  0x6c   : > { %p3090_p9 = pneg %p3089_p7  ;;  %p3096_p10 = por %p3095_p4, %p3094_p2 }
  0x6e   : > { %p3097_p6 = pnand %p3096_p10, %p3090_p9 }
  0x70   : > { %3100 = shalt.err (!%p3097_p6)
}
  0x71   : > { %s3101_s27 = scalar_lea.vmem %s3469_s9, 384  ;;  %s3262_s7 = smov [#allocation4]  }
  0x72   : > { %p3102_p11 = scmp.ne.s32.totalorder %s3469_s9, %s3101_s27  ;;  %s3106_s29 = sshll.u32 %s3262_s7, 4  ;;  %s3107_s29 = int_to_ptr.vmem [resolvable:$false] %s3106_s29 }
  0x73   : > { %s3108_s11 = scalar_lea.vmem %s3107_s29, 768  ;;  %p3109_p7 = scmp.lt.s32.totalorder %s3469_s9, %s3107_s29 }
  0x74   : > { %p3104_p13 = pnand %p3102_p11, %p3088_p5  ;;  %p3110_p12 = scmp.lt.s32.totalorder %s3108_s11, %s3101_s27 }
  0x76   : > { %p3105_p3 = pneg %p3104_p13  ;;  %p3111_p1 = por %p3110_p12, %p3109_p7 }
  0x78   : > { %p3112_p2 = pnand %p3111_p1, %p3105_p3 }
  0x7a   : > { %3115 = shalt.err (!%p3112_p2)
}
  0x7b   : > { %s3978_s17 = smov 4   ;;  %s3979_s8 = smov 64  }
  0x7c   : > { %2827 = dma.hbm_to_vmem [thread:$0]  (!%p3462_p0), %s3474_s14, 384, %s3469_s9, %s232_s15, %s3979_s8, %s3979_s8, %s3978_s17  }
  0x7d   : > { %s2798_s13 = smul.u32 80, %s3451_s16  ;;  %s3980_s3 = sand.u32 1, %s3256_s25  }
  0x7e   : > { %s2799_s5 = smul.u32 20, %s3248_s23  ;;  %s3520_s9 = scalar_lea.sflag [#allocation8], %s3980_s3 }
  0x7f   : > { %s2800_s18 = smul.u32 40, %s3252_s24  ;;  %s258_s12 = scalar_lea.vmem [#allocation7], %s2798_s13 }
  0x80   : > { %s267_s27 = sshll.u32 %s258_s12, 4  ;;  %s3121_s17 = scalar_lea.hbm %s3943_s1, 5120  ;;  %s3511_s27 = int_to_ptr.vmem [resolvable:$true] %s267_s27 }
  0x81   : > { %s264_s7 = sadd.s32 %s2800_s18, %s2799_s5 }
  0x82   : > { %s2460_s29 = sshll.u32 %s264_s7, 6 }
  0x83   : > { %s3516_s0 = scalar_lea.hbm %s3943_s1, %s2460_s29 }
  0x84   : > { %s3116_s16 = scalar_lea.hbm %s3516_s0, 1280  ;;  %p3122_p6 = scmp.lt.u32.totalorder %s3516_s0, %s3943_s1 }
  0x85   : > { %p3117_p9 = scmp.ne.s32.totalorder %s3516_s0, %s3116_s16  ;;  %p3123_p11 = scmp.lt.u32.totalorder %s3121_s17, %s3116_s16 }
  0x86   : > { %p3125_p3 = scmp.lt.u32.totalorder %s3116_s16, %s3516_s0 }
  0x87   : > { %p3119_p4 = pnand %p3117_p9, %p3088_p5  ;;  %p3124_p13 = por %p3123_p11, %p3122_p6 }
  0x89   : > { %p3120_p10 = pneg %p3119_p4  ;;  %p3126_p7 = por %p3125_p3, %p3124_p13 }
  0x8b   : > { %p3127_p12 = pnand %p3126_p7, %p3120_p10 }
  0x8d   : > { %3130 = shalt.err (!%p3127_p12)
}
  0x8e   : > { %s3131_s3 = scalar_lea.vmem %s3511_s27, 1280  ;;  %s3263_s13 = smov [#allocation7]  }
  0x8f   : > { %p3132_p1 = scmp.ne.s32.totalorder %s3511_s27, %s3131_s3  ;;  %s3136_s5 = sshll.u32 %s3263_s13, 4  ;;  %s3137_s5 = int_to_ptr.vmem [resolvable:$false] %s3136_s5 }
  0x90   : > { %s3138_s18 = scalar_lea.vmem %s3137_s5, 2560  ;;  %p3139_p4 = scmp.lt.s32.totalorder %s3511_s27, %s3137_s5 }
  0x91   : > { %p3134_p2 = pnand %p3132_p1, %p3088_p5  ;;  %p3140_p6 = scmp.lt.s32.totalorder %s3138_s18, %s3131_s3 }
  0x93   : > { %p3135_p9 = pneg %p3134_p2  ;;  %p3141_p11 = por %p3140_p6, %p3139_p4 }
  0x95   : > { %p3142_p13 = pnand %p3141_p11, %p3135_p9 }
  0x97   : > { %3145 = shalt.err (!%p3142_p13)
}
  0x98   : > { %s3264_s12 = smov 128   ;;  %s3265_s7 = smov 8  }
  0x99   : > { %2830 = dma.hbm_to_vmem [thread:$0]  (!%p3462_p0), %s3516_s0, 1280, %s3511_s27, %s3520_s9, %s3264_s12, %s3264_s12, %s3265_s7  }
  0x9a   : > { %p3981_p5 = scmp.ne.s32.totalorder %s3966_s30, 0 }
  0x9b   : > { %s3549_s29 = sand.u32 (!%p3981_p5), 1, %s3232_s19   ;;  %p3982_p10 = scmp.ne.s32.totalorder (!%p3981_p5), %s3963_s28, 0 }
  0x9c   : > { %279 = sbr.rel (%p3981_p5) target bundleno = 837 (0x345), region = 40  ;;  %s282_s16 = scalar_lea.sflag (!%p3981_p5), [#allocation5], %s3549_s29 }
  0x9d   : > { %s2801_s11 = smul.u32 (!%p3981_p5), 24, %s3549_s29 }
  0x9f   : > { %s3553_s14 = scalar_lea.vmem (!%p3981_p5), [#allocation4], %s2801_s11 }
  0xa3   : > { %3207 = dma.done.wait (%p3982_p10), %s282_s16, 384  }
  0xa4   : > { %3209 = vsyncadd (%p3982_p10), %s282_s16, 4294966912  ;;  %s290_s0 = sand.u32 1, %s3342_s26   ;;  %s2802_s2 = smul.u32 80, %s3549_s29 }
  0xa5   : > { %s291_s30 = scalar_lea.sflag [#allocation8], %s290_s0 }
  0xa6   : > { %s3561_s27 = scalar_lea.vmem [#allocation7], %s2802_s2 }
  0xa7   : > { %3211 = dma.done.wait (%p3982_p10), %s291_s30, 1280  }
  0xa8   : > { %3213 = vsyncadd (%p3982_p10), %s291_s30, 4294966016  ;;  %p3983_p0 = scmp.eq.s32.totalorder %s3342_s26, 0 }
  0xaa   : > { %3215 = dma.done.wait (%p3983_p0), [#allocation8], 2048   ;;  %p3984_p3 = pmov %p3983_p0 }
  0xab   : > { %p3985_p7 = pmov %p3983_p0 }
  0xac   : > { %3217 = vsyncadd (%p3984_p3), [#allocation8], 4294965248 }
  0xad   : > { %3219 = dma.done.wait (%p3985_p7), [#allocation11], 6144   ;;  %p3986_p12 = pmov %p3983_p0 }
  0xae   : > { %s2464_s9 = sshll.u32 %s3549_s29, 5  ;;  %v2915_v0 = vld [vmem:[#allocation9 + $0x40] sm:$0xff]   ;;  %v2917_v2 = vld [vmem:[#allocation9 + $0x48] sm:$0xff]   ;;  %v2919_v4 = vld [vmem:[#allocation9 + $0x50] sm:$0xff]   ;;  %v702_v34 = vlaneseq  ;;  %vm660_vm0 = vcmask 1040384   ;;  %vm691_vm1 = vcmask 1046528  }
  0xaf   : > { %3221 = vsyncadd (%p3986_p12), [#allocation11], 4294961152  ;;  %v2916_v1 = vld [vmem:[#allocation9] sm:$0xff]   ;;  %2629 = vmatprep.subr.bf16.mxu0 %v2915_v0  ;;  %v2918_v3 = vld [vmem:[#allocation9 + $0x8] sm:$0xff]   ;;  %vm765_vm3 = vcmask 519168   ;;  %vm906_vm4 = vcmask 1043968  }
  0xb0   : > { %2630 = vmatpush3.bf16.msra.mxu0 %v2916_v1  ;;  %v2920_v5 = vld [vmem:[#allocation9 + $0x10] sm:$0xff]   ;;  %v2921_v6 = vld [vmem:[#allocation9 + $0x58] sm:$0xff]   ;;  %v2923_v8 = vld [vmem:[#allocation9 + $0x60] sm:$0xff]   ;;  %v3588_v40 = vand.u32 127, %v702_v34  ;;  %vm907_vm5 = vsmask.f32 7938 }
  0xb1   : > { %2631 = vmatprep.subr.bf16.mxu0 %v2917_v2  ;;  %v2922_v7 = vld [vmem:[#allocation9 + $0x18] sm:$0xff]   ;;  %v2924_v9 = vld [vmem:[#allocation9 + $0x20] sm:$0xff]   ;;  %v2925_v10 = vld [vmem:[#allocation9 + $0x68] sm:$0xff]   ;;  %vm912_vm6 = vcmask 1040896   ;;  %vm913_vm7 = vsmask.f32 256 }
  0xb2   : > { %v2933_v11 = vld [vmem:[%s3561_s27 + $0x4] ss:$8 sps:$4 sm:$0xff]   ;;  %v2931_v17 = vld [vmem:[%s3561_s27] ss:$8 sps:$4 sm:$0xff]   ;;  %v2934_v18 = vld [vmem:[%s3561_s27 + $0x14] ss:$8 sps:$4 sm:$0xff]  }
  0xb3   : > { %v2926_v12 = vld [vmem:[#allocation9 + $0x28] sm:$0xff]   ;;  %555 = vmatprep.mubr.bf16.mxu0 %v2933_v11  ;;  %v2927_v13 = vld [vmem:[#allocation9 + $0x70] sm:$0xff]   ;;  %v2929_v15 = vld [vmem:[#allocation9 + $0x78] sm:$0xff]   ;;  %vm704_vm2 = vcmp.lt.s32.totalorder %v3588_v40, 64  ;;  %vm972_vm8 = vcmask 516096   ;;  %s3795_s26 = scalar_lea.vmem [#allocation12], %s2464_s9 }
  0xb4   : > { %2632 = vmatpush3.bf16.msra.mxu0 %v2918_v3  ;;  %v2928_v14 = vld [vmem:[#allocation9 + $0x30] sm:$0xff]   ;;  %v2930_v16 = vld [vmem:[#allocation9 + $0x38] sm:$0xff]   ;;  %vm3646_vm9 = vmand %vm912_vm6, %vm913_vm7  ;;  %p2501_p1 = scmp.ne.s32.totalorder %s3240_s21, 0 }
  0xb5   : > { %2633 = vmatprep.subr.bf16.mxu0 %v2919_v4  ;;  %v2936_v19 = vld [vmem:[%s3561_s27 + $0x10] ss:$8 sps:$4 sm:$0xff]   ;;  %v2937_v20 = vld [vmem:[%s3561_s27 + $0x24] ss:$8 sps:$4 sm:$0xff]   ;;  %v2939_v21 = vld [vmem:[%s3561_s27 + $0x20] ss:$8 sps:$4 sm:$0xff]  }
  0xb6   : > { %v2940_v22 = vld [vmem:[%s3561_s27 + $0x34] ss:$8 sps:$4 sm:$0xff]   ;;  %v2942_v23 = vld [vmem:[%s3561_s27 + $0x30] ss:$8 sps:$4 sm:$0xff]   ;;  %v2943_v24 = vld [vmem:[%s3561_s27 + $0x44] ss:$8 sps:$4 sm:$0xff]  }
  0xb7   : > { %v2945_v25 = vld [vmem:[%s3561_s27 + $0x40] ss:$8 sps:$4 sm:$0xff]   ;;  %v2593_v26 = vld [vmem:[%s3553_s14] sm:$0xff]   ;;  %vm3656_vm10 = vmand %vm906_vm4, %vm907_vm5 }
  0xb8   : > { %2634 = vmatpush3.bf16.msra.mxu0 %v2920_v5  ;;  %v2594_v27 = vunpack.c.l.bf16 %v2593_v26  ;;  %v2595_v28 = vunpack.c.h.bf16 %v2593_v26  ;;  %v2624_v29 = vld [vmem:[%s3553_s14 + $0x8] sm:$0xff]   ;;  %v3594_v53 = vld [vmem:[%s3553_s14 + $0x10] sm:$0xff]   ;;  %vm3690_vm11 = vmand %vm972_vm8, %vm913_vm7 }
  0xb9   : > { %2635 = vmatprep.subr.bf16.mxu0 %v2921_v6  ;;  %v2598_v32 = vunpack.c.l.bf16 %v2624_v29  ;;  %v2599_v44 = vunpack.c.h.bf16 %v2624_v29  ;;  %v2602_v59 = vunpack.c.l.bf16 %v3594_v53  ;;  %vm1040_vm12 = vmand (!%p2501_p1), %vm660_vm0, %vm913_vm7 }
  0xba   : > { %v608_v30 = vmul.f32 0.75, %v2594_v27  ;;  %v613_v31 = vmul.f32 0.25, %v2595_v28  ;;  %v609_v35 = vmul.f32 0.75, %v2595_v28  ;;  %v623_v36 = vmul.f32 0.25, %v2594_v27 }
  0xbb   : > { %v614_v37 = vmul.f32 0.25, %v2598_v32  ;;  %v610_v43 = vmul.f32 0.75, %v2598_v32  ;;  %v615_v52 = vmul.f32 0.25, %v2599_v44  ;;  %v611_v54 = vmul.f32 0.75, %v2599_v44 }
  0xbc   : > { %2636 = vmatpush3.bf16.msra.mxu0 %v2922_v7  ;;  %v618_v33 = vadd.f32 %v613_v31, %v608_v30  ;;  %v625_v41 = vadd.f32 %v623_v36, %v609_v35  ;;  %v3607_v5 = vmul.f32 0.25, %v2602_v59 }
  0xbd   : > { %2637 = vmatprep.subr.bf16.mxu0 %v2923_v8  ;;  %v619_v42 = vadd.f32 %v614_v37, %v609_v35  ;;  %v626_v51 = vadd.f32 %v613_v31, %v610_v43  ;;  %v620_v63 = vadd.f32 %v615_v52, %v610_v43  ;;  %v627_v0 = vadd.f32 %v614_v37, %v611_v54 }
  0xbe   : > { %v640_v38 = vrot.slane %v618_v33, 7  ;;  %v671_v39 = vrot.slane %v618_v33, 1  ;;  %v641_v47 = vrot.slane %v625_v41, 7  ;;  %v672_v48 = vrot.slane %v625_v41, 1 }
  0xbf   : > { %v642_v49 = vrot.slane %v619_v42, 7  ;;  %v673_v50 = vrot.slane %v619_v42, 1  ;;  %v643_v61 = vrot.slane %v626_v51, 7  ;;  %v674_v62 = vrot.slane %v626_v51, 1 }
  0xc0   : > { %2638 = vmatpush3.bf16.msra.mxu0 %v2924_v9  ;;  %v661_v45 = vsel %vm660_vm0, %v618_v33, %v640_v38  ;;  %v692_v46 = vsel %vm691_vm1, %v671_v39, %v618_v33  ;;  %v662_v56 = vsel %vm660_vm0, %v625_v41, %v641_v47  ;;  %v693_v57 = vsel %vm691_vm1, %v672_v48, %v625_v41 }
  0xc1   : > { %2639 = vmatprep.subr.bf16.mxu0 %v2925_v10  ;;  %v705_v55 = vsel %vm704_vm2, %v661_v45, %v692_v46  ;;  %v663_v58 = vsel %vm660_vm0, %v619_v42, %v642_v49  ;;  %v694_v60 = vsel %vm691_vm1, %v673_v50, %v619_v42  ;;  %v715_v1 = vmul.f32 0.75, %v618_v33 }
  0xc2   : > { %v735_v2 = vmul.f32 0.25, %v705_v55  ;;  %v706_v3 = vsel %vm704_vm2, %v662_v56, %v693_v57  ;;  %v707_v4 = vsel %vm704_vm2, %v663_v58, %v694_v60  ;;  %v664_v7 = vsel %vm660_vm0, %v626_v51, %v643_v61 }
  0xc3   : > { %v695_v8 = vsel %vm691_vm1, %v674_v62, %v626_v51  ;;  %v644_v9 = vrot.slane %v620_v63, 7  ;;  %v675_v10 = vrot.slane %v620_v63, 1  ;;  %v2603_v37 = vunpack.c.h.bf16 %v3594_v53 }
  0xc4   : > { %2640 = vmatpush3.bf16.msra.mxu0 %v2926_v12  ;;  %v716_v12 = vmul.f32 0.75, %v625_v41  ;;  %v3628_v45 = vmul.f32 0.75, %v620_v63  ;;  %v3630_v46 = vmul.f32 0.75, %v627_v0 }
  0xc5   : > { %2641 = vmatprep.subr.bf16.mxu0 %v2927_v13  ;;  %v645_v13 = vrot.slane %v627_v0, 7  ;;  %v665_v27 = vsel %vm660_vm0, %v620_v63, %v644_v9  ;;  %v696_v28 = vsel %vm691_vm1, %v675_v10, %v620_v63  ;;  %v617_v58 = vmul.f32 0.25, %v2603_v37 }
  0xc6   : > { %v709_v35 = vsel %vm704_vm2, %v665_v27, %v696_v28 }
  0xc7   : > { %v666_v29 = vsel %vm660_vm0, %v627_v0, %v645_v13  ;;  %v3635_v53 = vmul.f32 0.25, %v709_v35 }
  0xc8   : > { %2642 = vmatpush3.bf16.msra.mxu0 %v2928_v14  ;;  %v676_v14 = vrot.slane %v627_v0, 1 }
  0xc9   : > { %2643 = vmatprep.subr.bf16.mxu0 %v2929_v15  ;;  %v3611_v15 = vmul.f32 0.75, %v2602_v59 }
  0xca   : > { %v697_v30 = vsel %vm691_vm1, %v676_v14, %v627_v0  ;;  %v915_v0 = vld [vmem:[#allocation2 + $0x4] sm:$0x1] }
  0xcb   : > { %v3621_v31 = vadd.f32 %v615_v52, %v3611_v15 }
  0xcc   : > { %2644 = vmatpush3.bf16.msra.mxu0 %v2930_v16 }
  0xcd   : > { %v647_v47 = vrot.slane %v3621_v31, 7  ;;  %v678_v48 = vrot.slane %v3621_v31, 1 }
  0xcf   : > { %556 = vmatmul.mubr.bf16.vlgmr.msra.gmra.mrb[0].mxu0 %v2931_v17 }
  0xd0   : > { %563 = vmatprep.mubr.bf16.mxu0 %v2934_v18  ;;  %v736_v18 = vmul.f32 0.25, %v706_v3  ;;  %v699_v3 = vsel %vm691_vm1, %v678_v48, %v3621_v31 }
  0xd7   : > { %564 = vmatmul.mubr.bf16.gmra.mrb[4].mxu0 %v2936_v19  ;;  %v717_v19 = vmul.f32 0.75, %v619_v42  ;;  %v710_v42 = vsel %vm704_vm2, %v666_v29, %v697_v30 }
  0xd8   : > { %571 = vmatprep.mubr.bf16.mxu0 %v2937_v20  ;;  %v3637_v55 = vmul.f32 0.25, %v710_v42  ;;  %v927_v42 = vld [vmem:[#allocation2 + $0x14] sm:$0x1] }
  0xdf   : > { %572 = vmatmul.mubr.bf16.gmra.mrb[8].mxu0 %v2939_v21  ;;  %v737_v21 = vmul.f32 0.25, %v707_v4  ;;  %v624_v4 = vmul.f32 0.75, %v2603_v37 }
  0xe0   : > { %579 = vmatprep.mubr.bf16.mxu0 %v2940_v22  ;;  %v708_v22 = vsel %vm704_vm2, %v664_v7, %v695_v8 }
  0xe1   : > { %v738_v34 = vmul.f32 0.25, %v708_v22  ;;  %v3671_v27 = vadd.f32 %v624_v4, %v3607_v5 }
  0xe7   : > { %580 = vmatmul.mubr.bf16.gmra.mrb[12].mxu0 %v2942_v23  ;;  %v718_v23 = vmul.f32 0.75, %v626_v51 }
  0xe8   : > { %587 = vmatprep.mubr.bf16.mxu0 %v2943_v24  ;;  %v621_v24 = vadd.f32 %v3607_v5, %v611_v54 }
  0xea   : > { %v646_v36 = vrot.slane %v621_v24, 7  ;;  %v677_v43 = vrot.slane %v621_v24, 1  ;;  %v3640_v57 = vmul.f32 0.75, %v621_v24 }
  0xec   : > { %v667_v56 = vsel %vm660_vm0, %v621_v24, %v646_v36  ;;  %v698_v62 = vsel %vm691_vm1, %v677_v43, %v621_v24 }
  0xed   : > { %v711_v14 = vsel %vm704_vm2, %v667_v56, %v698_v62 }
  0xee   : > { %v3678_v36 = vmul.f32 0.25, %v711_v14 }
  0xef   : > { %588 = vmatmul.mubr.bf16.gmra.mrb[16].mxu0 %v2945_v25 }
 0x1a2   : > { %v2645_v6 = vpop.f32.mrb[0].mxu0 }
 0x1a3   : > { %v2646_v11 = vpop.f32.mrb[1].mxu0 }
 0x1a4   : > { %v2647_v16 = vadd.f32 %v2646_v11, %v2645_v6  ;;  %v2648_v17 = vpop.f32.mrb[2].mxu0 }
 0x1a5   : > { %v2649_v20 = vpop.f32.mrb[3].mxu0 }
 0x1a6   : > { %v725_v25 = vadd.f32 %v2647_v16, %v715_v1  ;;  %v2650_v26 = vadd.f32 %v2649_v20, %v2648_v17  ;;  %v622_v16 = vadd.f32 %v617_v58, %v3611_v15 }
 0x1a8   : > { %v745_v32 = vadd.f32 %v735_v2, %v725_v25  ;;  %v726_v33 = vadd.f32 %v2650_v26, %v716_v12  ;;  %v668_v2 = vsel %vm660_vm0, %v3621_v31, %v647_v47  ;;  %v921_v12 = vld [vmem:[#allocation2 + $0xc] sm:$0x1]  ;;  %v648_v5 = vrot.slane %v622_v16, 7 }
 0x1a9   : > { %v712_v26 = vsel %vm704_vm2, %v668_v2, %v699_v3  ;;  %v679_v47 = vrot.slane %v622_v16, 1  ;;  %v3686_v48 = vmul.f32 0.75, %v622_v16 }
 0x1aa   : > { %v755_v38 = vpack.c.bf16 %v745_v32, %v745_v32  ;;  %v746_v39 = vadd.f32 %v736_v18, %v726_v33  ;;  %v2651_v41 = vpop.f32.mrb[4].mxu0 }
 0x1ab   : > { %v2652_v44 = vpop.f32.mrb[5].mxu0 }
 0x1ac   : > { %766 = vst.msk [vmem:[#allocation2] sm:$0xf] %vm765_vm3, %v755_v38  ;;  %v807_v49 = vshrl.u32 %v755_v38, 16  ;;  %v756_v50 = vpack.c.bf16 %v746_v39, %v746_v39  ;;  %v2653_v51 = vadd.f32 %v2652_v44, %v2651_v41  ;;  %v2654_v52 = vpop.f32.mrb[6].mxu0  ;;  %v810_v6 = vshll.u32 %v755_v38, 16 }
 0x1ad   : > { %v2655_v54 = vpop.f32.mrb[7].mxu0  ;;  %v3682_v41 = vmul.f32 0.25, %v712_v26 }
 0x1ae   : > { %v809_v59 = vrot.slane %v807_v49, 7  ;;  %767 = vst.msk [vmem:[#allocation2 + $0x8] sm:$0xf] %vm765_vm3, %v756_v50  ;;  %v815_v60 = vshrl.u32 %v756_v50, 16  ;;  %v727_v61 = vadd.f32 %v2653_v51, %v717_v19  ;;  %v2656_v1 = vadd.f32 %v2655_v54, %v2654_v52 }
 0x1af   : > { %v818_v11 = vshll.u32 %v756_v50, 16  ;;  %v649_v54 = vrot.slane %v3671_v27, 7 }
 0x1b0   : > { %v813_v7 = vrot.slane %v809_v59, 4  ;;  %v817_v8 = vrot.slane %v815_v60, 7  ;;  %v747_v9 = vadd.f32 %v737_v21, %v727_v61  ;;  %v728_v13 = vadd.f32 %v2656_v1, %v718_v23  ;;  %v933_v1 = vld [vmem:[#allocation2 + $0x1c] sm:$0x1] }
 0x1b1   : > { %v812_v17 = vor.u32 %v810_v6, %v809_v59  ;;  %v3668_v23 = vmul.f32 0.75, %v3621_v31  ;;  %v680_v59 = vrot.slane %v3671_v27, 1 }
 0x1b2   : > { %v916_v18 = vsel %vm3646_vm9, %v813_v7, %v915_v0  ;;  %v821_v19 = vrot.slane %v817_v8, 4  ;;  %v757_v20 = vpack.c.bf16 %v747_v9, %v747_v9  ;;  %v2657_v21 = vpop.f32.mrb[8].mxu0  ;;  %v748_v24 = vadd.f32 %v738_v34, %v728_v13 }
 0x1b3   : > { %v909_v22 = vld [vmem:[#allocation2] sm:$0xf]  ;;  %917 = vst [vmem:[#allocation2 + $0x4] sm:$0x1] %v916_v18  ;;  %v2658_v25 = vpop.f32.mrb[9].mxu0  ;;  %v820_v28 = vor.u32 %v818_v11, %v817_v8  ;;  %v700_v8 = vsel %vm691_vm1, %v679_v47, %v622_v16 }
 0x1b4   : > { %v910_v15 = vsel %vm3656_vm10, %v812_v17, %v909_v22  ;;  %v922_v29 = vsel %vm3646_vm9, %v821_v19, %v921_v12  ;;  %768 = vst.msk [vmem:[#allocation2 + $0x10] sm:$0xf] %vm765_vm3, %v757_v20  ;;  %v823_v30 = vshrl.u32 %v757_v20, 16  ;;  %v2660_v32 = vpop.f32.mrb[10].mxu0  ;;  %v758_v34 = vpack.c.bf16 %v748_v24, %v748_v24 }
 0x1b5   : > { %911 = vst [vmem:[#allocation2] sm:$0xf] %v910_v15  ;;  %v918_v33 = vld [vmem:[#allocation2 + $0x8] sm:$0xf]  ;;  %923 = vst [vmem:[#allocation2 + $0xc] sm:$0x1] %v922_v29  ;;  %v2659_v31 = vadd.f32 %v2658_v25, %v2657_v21 }
 0x1b6   : > { %v2661_v35 = vpop.f32.mrb[11].mxu0  ;;  %v919_v37 = vsel %vm3656_vm10, %v820_v28, %v918_v33  ;;  %v825_v38 = vrot.slane %v823_v30, 7  ;;  %769 = vst.msk [vmem:[#allocation2 + $0x18] sm:$0xf] %vm765_vm3, %v758_v34  ;;  %v831_v43 = vshrl.u32 %v758_v34, 16  ;;  %v826_v50 = vshll.u32 %v757_v20, 16 }
 0x1b7   : > { %v2662_v39 = vadd.f32 %v2661_v35, %v2660_v32  ;;  %920 = vst [vmem:[#allocation2 + $0x8] sm:$0xf] %v919_v37  ;;  %v729_v44 = vadd.f32 %v2659_v31, %v3628_v45  ;;  %v669_v45 = vsel %vm660_vm0, %v622_v16, %v648_v5  ;;  %v834_v0 = vshll.u32 %v758_v34, 16  ;;  %v939_v34 = vld [vmem:[#allocation2 + $0x24] sm:$0x1] }
 0x1b8   : > { %v829_v51 = vrot.slane %v825_v38, 4  ;;  %v833_v56 = vrot.slane %v831_v43, 7  ;;  %v828_v61 = vor.u32 %v826_v50, %v825_v38  ;;  %v713_v28 = vsel %vm704_vm2, %v669_v45, %v700_v8 }
 0x1b9   : > { %v730_v52 = vadd.f32 %v2662_v39, %v3630_v46  ;;  %v749_v58 = vadd.f32 %v3635_v53, %v729_v44  ;;  %v670_v33 = vsel %vm660_vm0, %v3671_v27, %v649_v54  ;;  %v701_v5 = vsel %vm691_vm1, %v680_v59, %v3671_v27  ;;  %v945_v39 = vld [vmem:[#allocation2 + $0x2c] sm:$0x1] }
 0x1ba   : > { %v974_v60 = vld [vmem:[#allocation2 + $0x4] sm:$0x1]  ;;  %v928_v62 = vsel %vm3646_vm9, %v829_v51, %v927_v42  ;;  %v2663_v3 = vpop.f32.mrb[12].mxu0  ;;  %v837_v53 = vrot.slane %v833_v56, 4  ;;  %v836_v13 = vor.u32 %v834_v0, %v833_v56  ;;  %v743_v42 = vmul.f32 0.25, %v713_v28 }
 0x1bb   : > { %v750_v2 = vadd.f32 %v3637_v55, %v730_v52  ;;  %v975_v46 = vsel %vm3690_vm11, 0, %v974_v60  ;;  %v924_v4 = vld [vmem:[#allocation2 + $0x10] sm:$0xf]  ;;  %929 = vst [vmem:[#allocation2 + $0x14] sm:$0x1] %v928_v62  ;;  %v759_v6 = vpack.c.bf16 %v749_v58, %v749_v58  ;;  %v2664_v7 = vpop.f32.mrb[13].mxu0  ;;  %v714_v45 = vsel %vm704_vm2, %v670_v33, %v701_v5 }
 0x1bc   : > { %976 = vst [vmem:[#allocation2 + $0x4] sm:$0x1] %v975_v46  ;;  %v1004_v9 = vld [vmem:[#allocation2] sm:$0x1]  ;;  %v977_v11 = vld [vmem:[#allocation2 + $0xc] sm:$0x1]  ;;  %v925_v12 = vsel %vm3656_vm10, %v828_v61, %v924_v4  ;;  %v2665_v55 = vadd.f32 %v2664_v7, %v2663_v3  ;;  %v934_v16 = vsel %vm3646_vm9, %v837_v53, %v933_v1 }
 0x1bd   : > { %v760_v14 = vpack.c.bf16 %v750_v2, %v750_v2  ;;  %v2666_v17 = vpop.f32.mrb[14].mxu0  ;;  %v1005_v18 = vsel %vm3646_vm9, 0, %v1004_v9  ;;  %v978_v19 = vsel %vm3690_vm11, 0, %v977_v11  ;;  %926 = vst [vmem:[#allocation2 + $0x10] sm:$0xf] %v925_v12  ;;  %v839_v20 = vshrl.u32 %v759_v6, 16 }
 0x1be   : > { %770 = vst.msk [vmem:[#allocation2 + $0x20] sm:$0xf] %vm765_vm3, %v759_v6  ;;  %v2667_v21 = vpop.f32.mrb[15].mxu0  ;;  %1006 = vst [vmem:[#allocation2] sm:$0x1] %v1005_v18  ;;  %v731_v26 = vadd.f32 %v2665_v55, %v3640_v57  ;;  %v842_v37 = vshll.u32 %v759_v6, 16 }
 0x1bf   : > { %979 = vst [vmem:[#allocation2 + $0xc] sm:$0x1] %v978_v19  ;;  %v1007_v22 = vld [vmem:[#allocation2 + $0x8] sm:$0x1]  ;;  %v930_v24 = vld [vmem:[#allocation2 + $0x18] sm:$0xf]  ;;  %v2668_v15 = vadd.f32 %v2667_v21, %v2666_v17 }
 0x1c0   : > { %935 = vst [vmem:[#allocation2 + $0x1c] sm:$0x1] %v934_v16  ;;  %771 = vst.msk [vmem:[#allocation2 + $0x28] sm:$0xf] %vm765_vm3, %v760_v14  ;;  %v847_v25 = vshrl.u32 %v760_v14, 16  ;;  %v1008_v29 = vsel %vm3646_vm9, 0, %v1007_v22  ;;  %v931_v30 = vsel %vm3656_vm10, %v836_v13, %v930_v24  ;;  %v751_v57 = vadd.f32 %v3678_v36, %v731_v26 }
 0x1c1   : > { %v841_v32 = vrot.slane %v839_v20, 7  ;;  %1009 = vst [vmem:[#allocation2 + $0x8] sm:$0x1] %v1008_v29  ;;  %932 = vst [vmem:[#allocation2 + $0x18] sm:$0xf] %v931_v30  ;;  %v732_v35 = vadd.f32 %v2668_v15, %v3668_v23  ;;  %v724_v43 = vmul.f32 0.75, %v3671_v27 }
 0x1c2   : > { %v849_v31 = vrot.slane %v847_v25, 7  ;;  %v980_v44 = vld [vmem:[#allocation2 + $0x14] sm:$0x1]  ;;  %v850_v47 = vshll.u32 %v760_v14, 16  ;;  %v761_v51 = vpack.c.bf16 %v751_v57, %v751_v57  ;;  %v2669_v54 = vpop.f32.mrb[16].mxu0  ;;  %v744_v14 = vmul.f32 0.25, %v714_v45 }
 0x1c3   : > { %v845_v38 = vrot.slane %v841_v32, 4  ;;  %v752_v52 = vadd.f32 %v3682_v41, %v732_v35  ;;  %v981_v36 = vsel %vm3690_vm11, 0, %v980_v44  ;;  %v844_v23 = vor.u32 %v842_v37, %v841_v32  ;;  %v2670_v58 = vpop.f32.mrb[17].mxu0  ;;  %v951_v11 = vld [vmem:[#allocation2 + $0x34] sm:$0x1] }
 0x1c4   : > { %v853_v50 = vrot.slane %v849_v31, 4  ;;  %982 = vst [vmem:[#allocation2 + $0x14] sm:$0x1] %v981_v36  ;;  %v1010_v27 = vld [vmem:[#allocation2 + $0x10] sm:$0x1]  ;;  %v852_v60 = vor.u32 %v850_v47, %v849_v31  ;;  %v855_v61 = vshrl.u32 %v761_v51, 16  ;;  %v2671_v3 = vadd.f32 %v2670_v58, %v2669_v54 }
 0x1c5   : > { %v940_v56 = vsel %vm3646_vm9, %v845_v38, %v939_v34  ;;  %v936_v59 = vld [vmem:[#allocation2 + $0x20] sm:$0xf]  ;;  %772 = vst.msk [vmem:[#allocation2 + $0x30] sm:$0xf] %vm765_vm3, %v761_v51  ;;  %v762_v62 = vpack.c.bf16 %v752_v52, %v752_v52  ;;  %v1011_v0 = vsel %vm3646_vm9, 0, %v1010_v27  ;;  %v2672_v46 = vpop.f32.mrb[18].mxu0 }
 0x1c6   : > { %941 = vst [vmem:[#allocation2 + $0x24] sm:$0x1] %v940_v56  ;;  %v946_v41 = vsel %vm3646_vm9, %v853_v50, %v945_v39  ;;  %v937_v40 = vsel %vm3656_vm10, %v844_v23, %v936_v59  ;;  %1012 = vst [vmem:[#allocation2 + $0x10] sm:$0x1] %v1011_v0  ;;  %v857_v6 = vrot.slane %v855_v61, 7  ;;  %v2673_v8 = vpop.f32.mrb[19].mxu0  ;;  %v733_v12 = vadd.f32 %v2671_v3, %v3686_v48 }
 0x1c7   : > { %v983_v1 = vld [vmem:[#allocation2 + $0x1c] sm:$0x1]  ;;  %v942_v2 = vld [vmem:[#allocation2 + $0x28] sm:$0xf]  ;;  %947 = vst [vmem:[#allocation2 + $0x2c] sm:$0x1] %v946_v41  ;;  %v2674_v13 = vadd.f32 %v2673_v8, %v2672_v46 }
 0x1c8   : > { %v984_v4 = vsel %vm3690_vm11, 0, %v983_v1  ;;  %938 = vst [vmem:[#allocation2 + $0x20] sm:$0xf] %v937_v40  ;;  %v943_v53 = vsel %vm3656_vm10, %v852_v60, %v942_v2  ;;  %773 = vst.msk [vmem:[#allocation2 + $0x38] sm:$0xf] %vm765_vm3, %v762_v62  ;;  %v863_v7 = vshrl.u32 %v762_v62, 16  ;;  %v753_v20 = vadd.f32 %v743_v42, %v733_v12 }
 0x1c9   : > { %985 = vst [vmem:[#allocation2 + $0x1c] sm:$0x1] %v984_v4  ;;  %v1013_v9 = vld [vmem:[#allocation2 + $0x18] sm:$0x1]  ;;  %944 = vst [vmem:[#allocation2 + $0x28] sm:$0xf] %v943_v53  ;;  %v734_v21 = vadd.f32 %v2674_v13, %v724_v43 }
 0x1ca   : > { %v1014_v55 = vsel %vm3646_vm9, 0, %v1013_v9  ;;  %v858_v17 = vshll.u32 %v761_v51, 16  ;;  %v861_v18 = vrot.slane %v857_v6, 4  ;;  %v865_v19 = vrot.slane %v863_v7, 7  ;;  %v957_v16 = vld [vmem:[#allocation2 + $0x3c] sm:$0x1] }
 0x1cb   : > { %1015 = vst [vmem:[#allocation2 + $0x18] sm:$0x1] %v1014_v55  ;;  %v866_v25 = vshll.u32 %v762_v62, 16  ;;  %v763_v28 = vpack.c.bf16 %v753_v20, %v753_v20  ;;  %v754_v29 = vadd.f32 %v744_v14, %v734_v21  ;;  %v963_v51 = vld [vmem:[#allocation2 + $0x44] sm:$0x1] }
 0x1cc   : > { %v860_v22 = vor.u32 %v858_v17, %v857_v6  ;;  %v952_v24 = vsel %vm3646_vm9, %v861_v18, %v951_v11  ;;  %v869_v26 = vrot.slane %v865_v19, 4  ;;  %v948_v48 = vld [vmem:[#allocation2 + $0x30] sm:$0xf]  ;;  %v969_v58 = vld [vmem:[#allocation2 + $0x4c] sm:$0x1]  ;;  %v3266_v17 = vmov (!%p2501_p1), 0  }
 0x1cd   : > { %v986_v15 = vld [vmem:[#allocation2 + $0x24] sm:$0x1]  ;;  %953 = vst [vmem:[#allocation2 + $0x34] sm:$0x1] %v952_v24  ;;  %v868_v34 = vor.u32 %v866_v25, %v865_v19  ;;  %774 = vst.msk [vmem:[#allocation2 + $0x40] sm:$0xf] %vm765_vm3, %v763_v28  ;;  %v764_v38 = vpack.c.bf16 %v754_v29, %v754_v29 }
 0x1ce   : > { %v987_v30 = vsel %vm3690_vm11, 0, %v986_v15  ;;  %v989_v32 = vld [vmem:[#allocation2 + $0x2c] sm:$0x1]  ;;  %v949_v33 = vsel %vm3656_vm10, %v860_v22, %v948_v48  ;;  %v958_v31 = vsel %vm3646_vm9, %v869_v26, %v957_v16  ;;  %v871_v37 = vshrl.u32 %v763_v28, 16  ;;  %v1041_v55 = vld [vmem:[#allocation2 + $0x4] sm:$0x1] (!%p2501_p1) }
 0x1cf   : > { %988 = vst [vmem:[#allocation2 + $0x24] sm:$0x1] %v987_v30  ;;  %v1016_v57 = vld [vmem:[#allocation2 + $0x20] sm:$0x1]  ;;  %v990_v35 = vsel %vm3690_vm11, 0, %v989_v32  ;;  %v879_v50 = vshrl.u32 %v764_v38, 16 }
 0x1d0   : > { %950 = vst [vmem:[#allocation2 + $0x30] sm:$0xf] %v949_v33  ;;  %v954_v5 = vld [vmem:[#allocation2 + $0x38] sm:$0xf]  ;;  %959 = vst [vmem:[#allocation2 + $0x3c] sm:$0x1] %v958_v31 }
 0x1d1   : > { %v1017_v39 = vsel %vm3646_vm9, 0, %v1016_v57  ;;  %991 = vst [vmem:[#allocation2 + $0x2c] sm:$0x1] %v990_v35  ;;  %v1019_v42 = vld [vmem:[#allocation2 + $0x28] sm:$0x1]  ;;  %v955_v43 = vsel %vm3656_vm10, %v868_v34, %v954_v5  ;;  %v873_v47 = vrot.slane %v871_v37, 7 }
 0x1d2   : > { %1018 = vst [vmem:[#allocation2 + $0x20] sm:$0x1] %v1017_v39  ;;  %v1020_v44 = vsel %vm3646_vm9, 0, %v1019_v42  ;;  %956 = vst [vmem:[#allocation2 + $0x38] sm:$0xf] %v955_v43  ;;  %v874_v52 = vshll.u32 %v763_v28, 16 }
 0x1d3   : > { %775 = vst.msk [vmem:[#allocation2 + $0x48] sm:$0xf] %vm765_vm3, %v764_v38  ;;  %1021 = vst [vmem:[#allocation2 + $0x28] sm:$0x1] %v1020_v44  ;;  %v877_v54 = vrot.slane %v873_v47, 4  ;;  %v881_v36 = vrot.slane %v879_v50, 7 }
 0x1d4   : > { %v992_v23 = vld [vmem:[#allocation2 + $0x34] sm:$0x1]  ;;  %v882_v56 = vshll.u32 %v764_v38, 16  ;;  %v876_v27 = vor.u32 %v874_v52, %v873_v47  ;;  %v960_v62 = vld [vmem:[#allocation2 + $0x40] sm:$0xf]  ;;  %v1042_v49 = vsel (!%p2501_p1), %vm1040_vm12, 0, %v1041_v55 }
 0x1d5   : > { %v993_v45 = vsel %vm3690_vm11, 0, %v992_v23  ;;  %v964_v59 = vsel %vm3646_vm9, %v877_v54, %v963_v51  ;;  %v885_v60 = vrot.slane %v881_v36, 4  ;;  %1038 = vst [vmem:[#allocation2] sm:$0xf] (!%p2501_p1), %v3266_v17  ;;  %1043 = vst [vmem:[#allocation2 + $0x4] sm:$0x1] (!%p2501_p1), %v1042_v49 }
 0x1d6   : > { %994 = vst [vmem:[#allocation2 + $0x34] sm:$0x1] %v993_v45  ;;  %965 = vst [vmem:[#allocation2 + $0x44] sm:$0x1] %v964_v59  ;;  %v884_v0 = vor.u32 %v882_v56, %v881_v36  ;;  %v961_v2 = vsel %vm3656_vm10, %v876_v27, %v960_v62 }
 0x1d7   : > { %v1022_v41 = vld [vmem:[#allocation2 + $0x30] sm:$0x1]  ;;  %v995_v61 = vld [vmem:[#allocation2 + $0x3c] sm:$0x1]  ;;  %v970_v3 = vsel %vm3646_vm9, %v885_v60, %v969_v58  ;;  %962 = vst [vmem:[#allocation2 + $0x40] sm:$0xf] %v961_v2 }
 0x1d8   : > { %v1023_v1 = vsel %vm3646_vm9, 0, %v1022_v41  ;;  %v996_v40 = vsel %vm3690_vm11, 0, %v995_v61  ;;  %971 = vst [vmem:[#allocation2 + $0x4c] sm:$0x1] %v970_v3 }
 0x1d9   : > { %1024 = vst [vmem:[#allocation2 + $0x30] sm:$0x1] %v1023_v1  ;;  %997 = vst [vmem:[#allocation2 + $0x3c] sm:$0x1] %v996_v40  ;;  %v1025_v46 = vld [vmem:[#allocation2 + $0x38] sm:$0x1] }
 0x1da   : > { %v966_v4 = vld [vmem:[#allocation2 + $0x48] sm:$0xf]  ;;  %v1026_v53 = vsel %vm3646_vm9, 0, %v1025_v46 }
 0x1db   : > { %v967_v6 = vsel %vm3656_vm10, %v884_v0, %v966_v4  ;;  %1027 = vst [vmem:[#allocation2 + $0x38] sm:$0x1] %v1026_v53 }
 0x1dc   : > { %968 = vst [vmem:[#allocation2 + $0x48] sm:$0xf] %v967_v6 }
 0x1dd   : > { %v998_v7 = vld [vmem:[#allocation2 + $0x44] sm:$0x1] }
 0x1de   : > { %v999_v8 = vsel %vm3690_vm11, 0, %v998_v7  ;;  %v1028_v9 = vld [vmem:[#allocation2 + $0x40] sm:$0x1] }
 0x1df   : > { %1000 = vst [vmem:[#allocation2 + $0x44] sm:$0x1] %v999_v8  ;;  %v1001_v11 = vld [vmem:[#allocation2 + $0x4c] sm:$0x1]  ;;  %v1029_v12 = vsel %vm3646_vm9, 0, %v1028_v9  ;;  %1037 = sbr.rel (%p2501_p1) target bundleno = 486 (0x1e6), region = 60 }
 0x1e0   : > { %v1002_v13 = vsel %vm3690_vm11, 0, %v1001_v11  ;;  %1030 = vst [vmem:[#allocation2 + $0x40] sm:$0x1] %v1029_v12 }
 0x1e1   : > { %1003 = vst [vmem:[#allocation2 + $0x4c] sm:$0x1] %v1002_v13 }
 0x1e3   : > { %v1031_v10 = vld [vmem:[#allocation2 + $0x48] sm:$0x1] }
 0x1e4   : > { %v1032_v14 = vsel %vm3646_vm9, 0, %v1031_v10 }
 0x1e5   : > { %1033 = vst [vmem:[#allocation2 + $0x48] sm:$0x1] %v1032_v14 }
 0x1e6 PF: > { %p2502_p2 = scmp.ne.s32.totalorder %s3240_s21, 1 }
 0x1e7   : > { %vm1051_vm13 = vmand (!%p2502_p2), %vm660_vm0, %vm913_vm7  ;;  %v3267_v18 = vmov (!%p2502_p2), 0  }
 0x1e8   : > { %1047 = sbr.rel (%p2502_p2) target bundleno = 495 (0x1ef), region = 64  ;;  %v1052_v63 = vld [vmem:[#allocation2 + $0x4c] sm:$0x1] (!%p2502_p2)  ;;  %1049 = vst [vmem:[#allocation2 + $0x48] sm:$0xf] (!%p2502_p2), %v3267_v18 }
 0x1e9   : > { %v1053_v19 = vsel (!%p2502_p2), %vm1051_vm13, 0, %v1052_v63 }
 0x1ea   : > { %1054 = vst [vmem:[#allocation2 + $0x4c] sm:$0x1] (!%p2502_p2), %v1053_v19 }
 0x1ef PF: > { %v2946_v16 = vld [vmem:[#allocation10 + $0x40] sm:$0xff]   ;;  %v2948_v21 = vld [vmem:[#allocation10 + $0x48] sm:$0xff]   ;;  %v2950_v24 = vld [vmem:[#allocation10 + $0x50] sm:$0xff]   ;;  %vm1087_vm14 = vsmask.f32 3328  ;;  %s2577_s17 = sshll.u32 %s3240_s21, 3 }
 0x1f0   : > { %v2947_v20 = vld [vmem:[#allocation10] sm:$0xff]   ;;  %2675 = vmatprep.subr.bf16.mxu1 %v2946_v16  ;;  %v2949_v22 = vld [vmem:[#allocation10 + $0x8] sm:$0xff]   ;;  %v2951_v25 = vld [vmem:[#allocation10 + $0x10] sm:$0xff]   ;;  %vm1088_vm15 = vsmask.f32 7440  ;;  %s2578_s6 = sshll.u32 %s3244_s22, 4 }
 0x1f1   : > { %2676 = vmatpush3.bf16.msra.mxu1 %v2947_v20  ;;  %v2952_v26 = vld [vmem:[#allocation10 + $0x58] sm:$0xff]   ;;  %v2954_v48 = vld [vmem:[#allocation10 + $0x60] sm:$0xff]   ;;  %v2956_v29 = vld [vmem:[#allocation10 + $0x68] sm:$0xff]   ;;  %s2315_s8 = sadd.s32 %s2578_s6, %s2577_s17  ;;  %s2318_s3 = sshll.u32 %s3795_s26, 4  ;;  %s3882_s3 = int_to_ptr.vmem [resolvable:$true] %s2318_s3 }
 0x1f2   : > { %2677 = vmatprep.subr.bf16.mxu1 %v2948_v21  ;;  %v2953_v15 = vld [vmem:[#allocation10 + $0x18] sm:$0xff]   ;;  %v2955_v28 = vld [vmem:[#allocation10 + $0x20] sm:$0xff]   ;;  %v1056_v32 = vld [vmem:[#allocation2 + $0x8] sm:$0xf]  ;;  %s2579_s13 = sshll.u32 %s2315_s8, 6  ;;  %s3995_s22 = sld [smem:[#allocation26_spill]] }
 0x1f3   : > { %v1055_v30 = vld [vmem:[#allocation2] sm:$0xf]  ;;  %v2957_v34 = vld [vmem:[#allocation10 + $0x28] sm:$0xff]   ;;  %1064 = vst [vmem:[#allocation3 + $0x18] sm:$0xf] %v1056_v32  ;;  %v2958_v44 = vld [vmem:[#allocation10 + $0x70] sm:$0xff]  }
 0x1f4   : > { %v1071_v33 = vld [vmem:[#allocation2] sm:$0xf]  ;;  %1063 = vst [vmem:[#allocation3] sm:$0xf] %v1055_v30  ;;  %v1072_v31 = vld [vmem:[#allocation2 + $0x4] sm:$0x1]  ;;  %vm3805_vm0 = vmor %vm1087_vm14, %vm1088_vm15 }
 0x1f5   : > { %2678 = vmatpush3.bf16.msra.mxu1 %v2949_v22  ;;  %v1073_v57 = vld [vmem:[#allocation2 + $0x8] sm:$0xf]  ;;  %v1074_v35 = vld [vmem:[#allocation2 + $0xc] sm:$0x1]  ;;  %v1091_v5 = vshrl.u32 %v1071_v33, 16  ;;  %v1094_v37 = vshll.u32 %v1071_v33, 16 }
 0x1f6   : > { %2679 = vmatprep.subr.bf16.mxu1 %v2950_v24  ;;  %v1100_v38 = vshll.u32 %v1072_v31, 16  ;;  %v1105_v39 = vshrl.u32 %v1073_v57, 16  ;;  %v1108_v42 = vshll.u32 %v1073_v57, 16  ;;  %v1114_v43 = vshll.u32 %v1074_v35, 16  ;;  %v2966_v51 = vld [vmem:[#allocation10 + $0x140] sm:$0xff]   ;;  %v2959_v52 = vld [vmem:[#allocation10 + $0x30] sm:$0xff]  }
 0x1f7   : > { %v1093_v47 = vrot.slane %v1091_v5, 4  ;;  %v1096_v50 = vrot.slane %v1094_v37, 5  ;;  %v2960_v56 = vld [vmem:[#allocation10 + $0x78] sm:$0xff]   ;;  %2755 = vmatprep.subr.bf16.mxu0 %v2966_v51  ;;  %v2968_v41 = vld [vmem:[#allocation10 + $0x100] sm:$0xff]   ;;  %v2970_v1 = vld [vmem:[#allocation10 + $0x148] sm:$0xff]   ;;  %s2303_s7 = scalar_lea.sflag [#allocation6], %s3549_s29 }
 0x1f8   : > { %v1102_v54 = vrot.slane %v1100_v38, 5  ;;  %v1107_v36 = vrot.slane %v1105_v39, 4  ;;  %v1110_v23 = vrot.slane %v1108_v42, 5  ;;  %v1116_v59 = vrot.slane %v1114_v43, 5  ;;  %v2961_v61 = vld [vmem:[#allocation10 + $0x38] sm:$0xff]   ;;  %2756 = vmatpush3.bf16.msra.mxu0 %v2968_v41  ;;  %v2965_v2 = vld [vmem:[#allocation10 + $0xc0] sm:$0xff]   ;;  %s3996_s12 = smov %s3995_s22  ;;  %s3887_s18 = scalar_lea.hbm %s3995_s22, %s2579_s13 }
 0x1f9   : > { %2680 = vmatpush3.bf16.msra.mxu1 %v2951_v25  ;;  %v1097_v58 = vor.u32 %v1096_v50, %v1093_v47  ;;  %2757 = vmatprep.subr.bf16.mxu0 %v2970_v1  ;;  %v2972_v3 = vld [vmem:[#allocation10 + $0x108] sm:$0xff]   ;;  %v1057_v46 = vld [vmem:[#allocation2 + $0x10] sm:$0xf]  ;;  %v1058_v4 = vld [vmem:[#allocation2 + $0x18] sm:$0xf]  ;;  %s3146_s11 = scalar_lea.vmem %s3882_s3, 512 }
 0x1fa   : > { %2681 = vmatprep.subr.bf16.mxu1 %v2952_v26  ;;  %v1111_v27 = vor.u32 %v1110_v23, %v1107_v36  ;;  %1065 = vst [vmem:[#allocation3 + $0x30] sm:$0xf] %v1057_v46  ;;  %1066 = vst [vmem:[#allocation3 + $0x48] sm:$0xf] %v1058_v4  ;;  %v1075_v53 = vld [vmem:[#allocation2 + $0x10] sm:$0xf]  ;;  %p3147_p9 = scmp.ne.s32.totalorder %s3882_s3, %s3146_s11 }
 0x1fb   : > { %v1098_v60 = vrot.slane %v1097_v58, 4  ;;  %v1076_v6 = vld [vmem:[#allocation2 + $0x14] sm:$0x1]  ;;  %v1077_v7 = vld [vmem:[#allocation2 + $0x18] sm:$0xf]  ;;  %v1119_v9 = vshrl.u32 %v1075_v53, 16 }
 0x1fc   : > { %v1112_v62 = vrot.slane %v1111_v27, 4  ;;  %2758 = vmatpush3.bf16.msra.mxu0 %v2972_v3  ;;  %v1078_v8 = vld [vmem:[#allocation2 + $0x1c] sm:$0x1]  ;;  %v1122_v11 = vshll.u32 %v1075_v53, 16  ;;  %v1128_v12 = vshll.u32 %v1076_v6, 16  ;;  %v1133_v13 = vshrl.u32 %v1077_v7, 16  ;;  %p3148_p4 = pnand %p3147_p9, %p3445_p8 }
 0x1fd   : > { %2682 = vmatpush3.bf16.msra.mxu1 %v2953_v15  ;;  %v1103_v0 = vsel %vm3805_vm0, %v1098_v60, %v1102_v54  ;;  %v1136_v10 = vshll.u32 %v1077_v7, 16  ;;  %v1142_v14 = vshll.u32 %v1078_v8, 16  ;;  %v1121_v55 = vrot.slane %v1119_v9, 4  ;;  %v2977_v63 = vld [vmem:[#allocation10 + $0x150] sm:$0xff]   ;;  %v2967_v18 = vld [vmem:[#allocation10 + $0x80] sm:$0xff]   ;;  %v2969_v26 = vld [vmem:[#allocation10 + $0xc8] sm:$0xff]  }
 0x1fe   : > { %2683 = vmatprep.subr.bf16.mxu1 %v2954_v48  ;;  %v1117_v40 = vsel %vm3805_vm0, %v1112_v62, %v1116_v59  ;;  %1210 = vst [vmem:[#allocation3 + $0x4] sm:$0xf] %v1103_v0  ;;  %v1124_v17 = vrot.slane %v1122_v11, 5  ;;  %v1135_v49 = vrot.slane %v1133_v13, 4  ;;  %v1130_v20 = vrot.slane %v1128_v12, 5  ;;  %2759 = vmatprep.subr.bf16.mxu0 %v2977_v63  ;;  %v2981_v33 = vld [vmem:[#allocation10 + $0x158] sm:$0xff]   ;;  %p3149_p6 = pneg %p3148_p4 }
 0x1ff   : > { %1211 = vst [vmem:[#allocation3 + $0x1c] sm:$0xf] %v1117_v40  ;;  %v1138_v19 = vrot.slane %v1136_v10, 5  ;;  %v2962_v21 = vld [vmem:[#allocation3] ss:$24 sps:$4 sm:$0xff]   ;;  %v1144_v25 = vrot.slane %v1142_v14, 5 }
 0x200   : > { %v1125_v16 = vor.u32 %v1124_v17, %v1121_v55  ;;  %v2978_v31 = vld [vmem:[#allocation10 + $0x90] sm:$0xff]   ;;  %v2983_v57 = vld [vmem:[#allocation10 + $0x118] sm:$0xff]   ;;  %v1059_v35 = vld [vmem:[#allocation2 + $0x20] sm:$0xf]  ;;  %s3268_s16 = smov [#allocation12]  }
 0x201   : > { %2684 = vmatpush3.bf16.msra.mxu1 %v2955_v28  ;;  %v1139_v24 = vor.u32 %v1138_v19, %v1135_v49  ;;  %v2979_v28 = vld [vmem:[#allocation10 + $0x110] sm:$0xff]   ;;  %v1060_v5 = vld [vmem:[#allocation2 + $0x28] sm:$0xf]  ;;  %v2980_v37 = vld [vmem:[#allocation10 + $0xd8] sm:$0xff]   ;;  %1067 = vst [vmem:[#allocation3 + $0x60] sm:$0xf] %v1059_v35 }
 0x202   : > { %2685 = vmatprep.subr.bf16.mxu1 %v2956_v29  ;;  %v1126_v15 = vrot.slane %v1125_v16, 4  ;;  %v2971_v29 = vld [vmem:[#allocation10 + $0x88] sm:$0xff]   ;;  %2760 = vmatpush3.bf16.msra.mxu0 %v2979_v28  ;;  %1068 = vst [vmem:[#allocation3 + $0x78] sm:$0xf] %v1060_v5  ;;  %v1079_v38 = vld [vmem:[#allocation2 + $0x20] sm:$0xf] }
 0x203   : > { %v1140_v48 = vrot.slane %v1139_v24, 4  ;;  %2761 = vmatprep.subr.bf16.mxu0 %v2981_v33  ;;  %v1080_v39 = vld [vmem:[#allocation2 + $0x24] sm:$0x1]  ;;  %v1081_v42 = vld [vmem:[#allocation2 + $0x28] sm:$0xf]  ;;  %v1150_v47 = vshll.u32 %v1079_v38, 16 }
 0x204   : > { %v1131_v30 = vsel %vm3805_vm0, %v1126_v15, %v1130_v20  ;;  %v1082_v43 = vld [vmem:[#allocation2 + $0x2c] sm:$0x1]  ;;  %v1156_v50 = vshll.u32 %v1080_v39, 16  ;;  %v1161_v51 = vshrl.u32 %v1081_v42, 16  ;;  %v2982_v36 = vld [vmem:[#allocation10 + $0x98] sm:$0xff]   ;;  %v2988_v27 = vld [vmem:[#allocation10 + $0x160] sm:$0xff]  }
 0x205   : > { %2686 = vmatpush3.bf16.msra.mxu1 %v2957_v34  ;;  %v1145_v32 = vsel %vm3805_vm0, %v1140_v48, %v1144_v25  ;;  %1212 = vst [vmem:[#allocation3 + $0x34] sm:$0xf] %v1131_v30  ;;  %v2976_v34 = vld [vmem:[#allocation10 + $0xd0] sm:$0xff]   ;;  %v1170_v54 = vshll.u32 %v1082_v43, 16  ;;  %v2987_v41 = vld [vmem:[#allocation10 + $0xe0] sm:$0xff]   ;;  %v2992_v6 = vld [vmem:[#allocation10 + $0x168] sm:$0xff]  }
 0x206   : > { %2687 = vmatprep.subr.bf16.mxu1 %v2958_v44  ;;  %v2964_v22 = vld [vmem:[#allocation3 + $0x4] ss:$24 sps:$4 sm:$0xff]   ;;  %1213 = vst [vmem:[#allocation3 + $0x4c] sm:$0xf] %v1145_v32  ;;  %2762 = vmatpush3.bf16.msra.mxu0 %v2983_v57  ;;  %v1147_v44 = vshrl.u32 %v1079_v38, 16  ;;  %v1163_v58 = vrot.slane %v1161_v51, 4 }
 0x207   : > { %2107 = vmatprep.mubr.bf16.mxu1 %v2964_v22  ;;  %v1158_v59 = vrot.slane %v1156_v50, 5  ;;  %v2975_v62 = vld [vmem:[#allocation3 + $0x30] ss:$24 sps:$4 sm:$0xff]   ;;  %v1172_v1 = vrot.slane %v1170_v54, 5  ;;  %2763 = vmatprep.subr.bf16.mxu0 %v2988_v27  ;;  %v2991_v8 = vld [vmem:[#allocation10 + $0xe8] sm:$0xff]   ;;  %v2999_v22 = vld [vmem:[#allocation10 + $0x170] sm:$0xff]  }
 0x208   : > { %v1149_v23 = vrot.slane %v1147_v44, 4  ;;  %v2990_v3 = vld [vmem:[#allocation10 + $0x120] sm:$0xff]   ;;  %v2993_v9 = vld [vmem:[#allocation10 + $0xa8] sm:$0xff]   ;;  %v1061_v12 = vld [vmem:[#allocation2 + $0x30] sm:$0xf]  ;;  %s3150_s14 = sshll.u32 %s3268_s16, 4  ;;  %s3151_s14 = int_to_ptr.vmem [resolvable:$false] %s3150_s14 }
 0x209   : > { %2688 = vmatpush3.bf16.msra.mxu1 %v2959_v52  ;;  %v1164_v52 = vshll.u32 %v1081_v42, 16  ;;  %v2989_v4 = vld [vmem:[#allocation10 + $0xa0] sm:$0xff]   ;;  %v2994_v11 = vld [vmem:[#allocation10 + $0x128] sm:$0xff]   ;;  %v1062_v13 = vld [vmem:[#allocation2 + $0x38] sm:$0xf]  ;;  %s3152_s0 = scalar_lea.vmem %s3151_s14, 1024  ;;  %p3153_p11 = scmp.lt.s32.totalorder %s3882_s3, %s3151_s14 }
 0x20a   : > { %2689 = vmatprep.subr.bf16.mxu1 %v2960_v56  ;;  %v1152_v56 = vrot.slane %v1150_v47, 5  ;;  %2764 = vmatpush3.bf16.msra.mxu0 %v2990_v3  ;;  %v1083_v10 = vld [vmem:[#allocation2 + $0x30] sm:$0xf]  ;;  %1069 = vst [vmem:[#allocation3 + $0x90] sm:$0xf] %v1061_v12  ;;  %v3002_v5 = vld [vmem:[#allocation10 + $0xf8] sm:$0xff]   ;;  %p3154_p13 = scmp.lt.s32.totalorder %s3152_s0, %s3146_s11 }
 0x20b   : > { %v1166_v60 = vrot.slane %v1164_v52, 5  ;;  %2765 = vmatprep.subr.bf16.mxu0 %v2992_v6  ;;  %1070 = vst [vmem:[#allocation3 + $0xa8] sm:$0xf] %v1062_v13  ;;  %v1084_v14 = vld [vmem:[#allocation2 + $0x34] sm:$0x1]  ;;  %v1175_v49 = vshrl.u32 %v1083_v10, 16 }
 0x20c   : > { %v1153_v0 = vor.u32 %v1152_v56, %v1149_v23  ;;  %v1085_v55 = vld [vmem:[#allocation2 + $0x38] sm:$0xf]  ;;  %v1086_v17 = vld [vmem:[#allocation2 + $0x3c] sm:$0x1]  ;;  %v1178_v63 = vshll.u32 %v1083_v10, 16  ;;  %v3000_v28 = vld [vmem:[#allocation10 + $0xb0] sm:$0xff]   ;;  %p3155_p5 = por %p3154_p13, %p3153_p11 }
 0x20d   : > { %2690 = vmatpush3.bf16.msra.mxu1 %v2961_v61  ;;  %v2973_v61 = vld [vmem:[#allocation3 + $0x34] ss:$24 sps:$4 sm:$0xff]   ;;  %v1167_v40 = vor.u32 %v1166_v60, %v1163_v58  ;;  %v1189_v19 = vshrl.u32 %v1085_v55, 16  ;;  %v1192_v16 = vshll.u32 %v1085_v55, 16  ;;  %v1198_v20 = vshll.u32 %v1086_v17, 16  ;;  %v3001_v57 = vld [vmem:[#allocation10 + $0x130] sm:$0xff]  }
 0x20e   : > { %2715 = vmatprep.subr.bf16.mxu1 %v2965_v2  ;;  %v1154_v2 = vrot.slane %v1153_v0, 4  ;;  %2766 = vmatpush3.bf16.msra.mxu0 %v2994_v11  ;;  %v1177_v24 = vrot.slane %v1175_v49, 4  ;;  %v1180_v25 = vrot.slane %v1178_v63, 5  ;;  %v2986_v30 = vld [vmem:[#allocation3 + $0x60] ss:$24 sps:$4 sm:$0xff]   ;;  %v3003_v38 = vld [vmem:[#allocation10 + $0x178] sm:$0xff]   ;;  %p3156_p10 = pnand %p3155_p5, %p3149_p6 }
 0x20f   : > { %v1168_v46 = vrot.slane %v1167_v40, 4  ;;  %v1194_v48 = vrot.slane %v1192_v16, 5  ;;  %2767 = vmatprep.subr.bf16.mxu0 %v2999_v22  ;;  %v1200_v33 = vrot.slane %v1198_v20, 5  ;;  %v3004_v42 = vld [vmem:[#allocation10 + $0xb8] sm:$0xff]   ;;  %v1219_v44 = vld [vmem:[#allocation2 + $0x8] sm:$0xf] }
 0x210   : > { %2108 = vmatmul.mubr.bf16.vlgmr.msra.gmra.mrb[0].mxu1 %v2962_v21  ;;  %v1159_v53 = vsel %vm3805_vm0, %v1154_v2, %v1158_v59  ;;  %v2998_v21 = vld [vmem:[#allocation10 + $0xf0] sm:$0xff]   ;;  %v1181_v32 = vor.u32 %v1180_v25, %v1177_v24  ;;  %v3005_v43 = vld [vmem:[#allocation10 + $0x138] sm:$0xff]   ;;  %1227 = vst [vmem:[#allocation3 + $0x8] sm:$0xf] %v1219_v44  ;;  %v1235_v50 = vld [vmem:[#allocation2 + $0x8] sm:$0xf] }
 0x211   : > { %2716 = vmatpush3.bf16.msra.mxu1 %v2967_v18  ;;  %2115 = vmatprep.mubr.bf16.mxu1 %v2973_v61  ;;  %v1173_v7 = vsel %vm3805_vm0, %v1168_v46, %v1172_v1  ;;  %1214 = vst [vmem:[#allocation3 + $0x64] sm:$0xf] %v1159_v53  ;;  %v1184_v18 = vshll.u32 %v1084_v14, 16  ;;  %v1220_v47 = vld [vmem:[#allocation2 + $0x10] sm:$0xf]  ;;  %v1255_v23 = vshll.u32 %v1235_v50, 16 }
 0x212   : > { %2717 = vmatprep.subr.bf16.mxu1 %v2969_v26  ;;  %1215 = vst [vmem:[#allocation3 + $0x7c] sm:$0xf] %v1173_v7  ;;  %v1191_v26 = vrot.slane %v1189_v19, 4  ;;  %2768 = vmatpush3.bf16.msra.mxu0 %v3001_v57  ;;  %v1236_v51 = vld [vmem:[#allocation2 + $0xc] sm:$0x1] }
 0x213   : > { %v1186_v15 = vrot.slane %v1184_v18, 5  ;;  %2769 = vmatprep.subr.bf16.mxu0 %v3003_v38  ;;  %1228 = vst [vmem:[#allocation3 + $0x20] sm:$0xf] %v1220_v47  ;;  %v1237_v52 = vld [vmem:[#allocation2 + $0x10] sm:$0xf]  ;;  %v1261_v56 = vshll.u32 %v1236_v51, 16 }
 0x214   : > { %v1238_v54 = vld [vmem:[#allocation2 + $0x14] sm:$0x1]  ;;  %v1266_v58 = vshrl.u32 %v1237_v52, 16  ;;  %v1269_v27 = vshll.u32 %v1237_v52, 16  ;;  %v1380_v60 = vld [vmem:[#allocation2 + $0x10] sm:$0xf] }
 0x215   : > { %2718 = vmatpush3.bf16.msra.mxu1 %v2971_v29  ;;  %v1275_v59 = vshll.u32 %v1238_v54, 16  ;;  %v1257_v61 = vrot.slane %v1255_v23, 5  ;;  %1388 = vst [vmem:[#allocation3 + $0x10] sm:$0xf] %v1380_v60  ;;  %v1396_v0 = vld [vmem:[#allocation2 + $0x10] sm:$0xf] }
 0x216   : > { %2719 = vmatprep.subr.bf16.mxu1 %v2976_v34  ;;  %v1195_v34 = vor.u32 %v1194_v48, %v1191_v26  ;;  %2770 = vmatpush3.bf16.msra.mxu0 %v3005_v43  ;;  %v1263_v1 = vrot.slane %v1261_v56, 5  ;;  %v1268_v40 = vrot.slane %v1266_v58, 4  ;;  %v1271_v2 = vrot.slane %v1269_v27, 5  ;;  %v1397_v46 = vld [vmem:[#allocation2 + $0x14] sm:$0x1] }
 0x217   : > { %v1277_v3 = vrot.slane %v1275_v59, 5  ;;  %v1398_v53 = vld [vmem:[#allocation2 + $0x18] sm:$0xf]  ;;  %v1399_v6 = vld [vmem:[#allocation2 + $0x1c] sm:$0x1]  ;;  %v1413_v7 = vshrl.u32 %v1396_v0, 16 }
 0x218   : > { %2116 = vmatmul.mubr.bf16.gmra.mrb[4].mxu1 %v2975_v62  ;;  %v1196_v35 = vrot.slane %v1195_v34, 4  ;;  %v1381_v62 = vld [vmem:[#allocation2 + $0x18] sm:$0xf]  ;;  %v1272_v11 = vor.u32 %v1271_v2, %v1268_v40  ;;  %v1416_v12 = vshll.u32 %v1396_v0, 16  ;;  %v1422_v14 = vshll.u32 %v1397_v46, 16 }
 0x219   : > { %2720 = vmatpush3.bf16.msra.mxu1 %v2978_v31  ;;  %v2984_v29 = vld [vmem:[#allocation3 + $0x64] ss:$24 sps:$4 sm:$0xff]   ;;  %v1182_v31 = vrot.slane %v1181_v32, 4  ;;  %1389 = vst [vmem:[#allocation3 + $0x28] sm:$0xf] %v1381_v62  ;;  %v1415_v10 = vrot.slane %v1413_v7, 4 }
 0x21a   : > { %2721 = vmatprep.subr.bf16.mxu1 %v2980_v37  ;;  %2123 = vmatprep.mubr.bf16.mxu1 %v2984_v29  ;;  %v1201_v39 = vsel %vm3805_vm0, %v1196_v35, %v1200_v33  ;;  %v1427_v55 = vshrl.u32 %v1398_v53, 16  ;;  %v1221_v17 = vld [vmem:[#allocation2 + $0x18] sm:$0xf]  ;;  %v1273_v49 = vrot.slane %v1272_v11, 4  ;;  %v1418_v63 = vrot.slane %v1416_v12, 5 }
 0x21b   : > { %v1187_v37 = vsel %vm3805_vm0, %v1182_v31, %v1186_v15  ;;  %1217 = vst [vmem:[#allocation3 + $0xac] sm:$0xf] %v1201_v39  ;;  %v1430_v18 = vshll.u32 %v1398_v53, 16  ;;  %v1436_v19 = vshll.u32 %v1399_v6, 16  ;;  %v1222_v16 = vld [vmem:[#allocation2 + $0x20] sm:$0xf] }
 0x21c   : > { %1216 = vst [vmem:[#allocation3 + $0x94] sm:$0xf] %v1187_v37  ;;  %1229 = vst [vmem:[#allocation3 + $0x38] sm:$0xf] %v1221_v17  ;;  %v1429_v22 = vrot.slane %v1427_v55, 4  ;;  %v1278_v26 = vsel %vm3805_vm0, %v1273_v49, %v1277_v3  ;;  %v1419_v15 = vor.u32 %v1418_v63, %v1415_v10 }
 0x21d   : > { %2722 = vmatpush3.bf16.msra.mxu1 %v2982_v36  ;;  %v1252_v36 = vshrl.u32 %v1235_v50, 16  ;;  %1230 = vst [vmem:[#allocation3 + $0x50] sm:$0xf] %v1222_v16  ;;  %v1239_v24 = vld [vmem:[#allocation2 + $0x18] sm:$0xf]  ;;  %v1432_v48 = vrot.slane %v1430_v18, 5 }
 0x21e   : > { %2723 = vmatprep.subr.bf16.mxu1 %v2987_v41  ;;  %v1240_v25 = vld [vmem:[#allocation2 + $0x1c] sm:$0x1]  ;;  %v1241_v29 = vld [vmem:[#allocation2 + $0x20] sm:$0xf]  ;;  %1372 = vst [vmem:[#allocation3 + $0x24] sm:$0xf] %v1278_v26 }
 0x21f   : > { %v1254_v41 = vrot.slane %v1252_v36, 4  ;;  %v1280_v32 = vshrl.u32 %v1239_v24, 16  ;;  %v1283_v33 = vshll.u32 %v1239_v24, 16  ;;  %v1289_v34 = vshll.u32 %v1240_v25, 16  ;;  %v1382_v57 = vld [vmem:[#allocation2 + $0x20] sm:$0xf] }
 0x220   : > { %2124 = vmatmul.mubr.bf16.gmra.mrb[8].mxu1 %v2986_v30  ;;  %v1242_v30 = vld [vmem:[#allocation2 + $0x24] sm:$0x1]  ;;  %v1294_v31 = vshrl.u32 %v1241_v29, 16  ;;  %v1420_v35 = vrot.slane %v1419_v15, 4  ;;  %v1297_v37 = vshll.u32 %v1241_v29, 16 }
 0x221   : > { %2724 = vmatpush3.bf16.msra.mxu1 %v2989_v4  ;;  %v1258_v4 = vor.u32 %v1257_v61, %v1254_v41  ;;  %v1303_v38 = vshll.u32 %v1242_v30, 16  ;;  %v1383_v39 = vld [vmem:[#allocation2 + $0x28] sm:$0xf]  ;;  %1390 = vst [vmem:[#allocation3 + $0x40] sm:$0xf] %v1382_v57  ;;  %v1285_v43 = vrot.slane %v1283_v33, 5 }
 0x222   : > { %2725 = vmatprep.subr.bf16.mxu1 %v2991_v8  ;;  %v1291_v44 = vrot.slane %v1289_v34, 5  ;;  %v1296_v47 = vrot.slane %v1294_v31, 4  ;;  %1391 = vst [vmem:[#allocation3 + $0x58] sm:$0xf] %v1383_v39  ;;  %v1400_v50 = vld [vmem:[#allocation2 + $0x20] sm:$0xf] }
 0x223   : > { %v2995_v8 = vld [vmem:[#allocation3 + $0x94] ss:$24 sps:$4 sm:$0xff]   ;;  %v1259_v13 = vrot.slane %v1258_v4, 4  ;;  %v1299_v54 = vrot.slane %v1297_v37, 5  ;;  %v1305_v36 = vrot.slane %v1303_v38, 5  ;;  %v1441_v59 = vshrl.u32 %v1400_v50, 16 }
 0x224   : > { %2131 = vmatprep.mubr.bf16.mxu1 %v2995_v8  ;;  %v1401_v23 = vld [vmem:[#allocation2 + $0x24] sm:$0x1]  ;;  %v1402_v58 = vld [vmem:[#allocation2 + $0x28] sm:$0xf]  ;;  %v1403_v27 = vld [vmem:[#allocation2 + $0x2c] sm:$0x1] }
 0x225   : > { %2726 = vmatpush3.bf16.msra.mxu1 %v2993_v9  ;;  %v2997_v9 = vld [vmem:[#allocation3 + $0x90] ss:$24 sps:$4 sm:$0xff]   ;;  %v1264_v20 = vsel %vm3805_vm0, %v1259_v13, %v1263_v1  ;;  %v1444_v60 = vshll.u32 %v1400_v50, 16  ;;  %v1300_v61 = vor.u32 %v1299_v54, %v1296_v47  ;;  %v1450_v62 = vshll.u32 %v1401_v23, 16  ;;  %v1223_v1 = vld [vmem:[#allocation2 + $0x28] sm:$0xf] }
 0x226   : > { %2727 = vmatprep.subr.bf16.mxu1 %v2998_v21  ;;  %v1424_v21 = vrot.slane %v1422_v14, 5  ;;  %1371 = vst [vmem:[#allocation3 + $0xc] sm:$0xf] %v1264_v20  ;;  %v1455_v0 = vshrl.u32 %v1402_v58, 16  ;;  %v1224_v40 = vld [vmem:[#allocation2 + $0x30] sm:$0xf] }
 0x227   : > { %v1443_v3 = vrot.slane %v1441_v59, 4  ;;  %v1446_v46 = vrot.slane %v1444_v60, 5  ;;  %v1458_v4 = vshll.u32 %v1402_v58, 16  ;;  %1231 = vst [vmem:[#allocation3 + $0x68] sm:$0xf] %v1223_v1  ;;  %v1301_v7 = vrot.slane %v1300_v61, 4 }
 0x228   : > { %2132 = vmatmul.mubr.bf16.gmra.mrb[12].mxu1 %v2997_v9  ;;  %v1425_v51 = vsel %vm3805_vm0, %v1420_v35, %v1424_v21  ;;  %1232 = vst [vmem:[#allocation3 + $0x80] sm:$0xf] %v1224_v40  ;;  %v3006_v53 = vld [vmem:[#allocation3 + $0x8] ss:$24 sps:$4 sm:$0xff]   ;;  %v1452_v11 = vrot.slane %v1450_v62, 5  ;;  %v1457_v12 = vrot.slane %v1455_v0, 4 }
 0x229   : > { %2728 = vmatpush3.bf16.msra.mxu1 %v3000_v28  ;;  %v1438_v28 = vrot.slane %v1436_v19, 5  ;;  %1532 = vst [vmem:[#allocation3 + $0x14] sm:$0xf] %v1425_v51  ;;  %v1447_v9 = vor.u32 %v1446_v46, %v1443_v3  ;;  %v1243_v13 = vld [vmem:[#allocation2 + $0x28] sm:$0xf]  ;;  %v1306_v14 = vsel %vm3805_vm0, %v1301_v7, %v1305_v36  ;;  %v1460_v55 = vrot.slane %v1458_v4, 5 }
 0x22a   : > { %2729 = vmatprep.subr.bf16.mxu1 %v3002_v5  ;;  %v1433_v5 = vor.u32 %v1432_v48, %v1429_v22  ;;  %v1244_v10 = vld [vmem:[#allocation2 + $0x2c] sm:$0x1]  ;;  %v1464_v17 = vshll.u32 %v1403_v27, 16  ;;  %v1245_v49 = vld [vmem:[#allocation2 + $0x30] sm:$0xf]  ;;  %v1308_v19 = vshrl.u32 %v1243_v13, 16 }
 0x22b   : > { %v1246_v63 = vld [vmem:[#allocation2 + $0x34] sm:$0x1]  ;;  %1374 = vst [vmem:[#allocation3 + $0x54] sm:$0xf] %v1306_v14  ;;  %v1448_v18 = vrot.slane %v1447_v9, 4  ;;  %v1311_v16 = vshll.u32 %v1243_v13, 16  ;;  %v1461_v22 = vor.u32 %v1460_v55, %v1457_v12 }
 0x22c   : > { %v1434_v52 = vrot.slane %v1433_v5, 4  ;;  %v1317_v20 = vshll.u32 %v1244_v10, 16  ;;  %v1384_v21 = vld [vmem:[#allocation2 + $0x30] sm:$0xf]  ;;  %v1466_v24 = vrot.slane %v1464_v17, 5  ;;  %v1322_v25 = vshrl.u32 %v1245_v49, 16 }
 0x22d   : > { %2730 = vmatpush3.bf16.msra.mxu1 %v3004_v42  ;;  %v1282_v42 = vrot.slane %v1280_v32, 4  ;;  %v3008_v6 = vld [vmem:[#allocation3 + $0xc] ss:$24 sps:$4 sm:$0xff]   ;;  %v1325_v26 = vshll.u32 %v1245_v49, 16  ;;  %v1385_v15 = vld [vmem:[#allocation2 + $0x38] sm:$0xf]  ;;  %v1453_v48 = vsel %vm3805_vm0, %v1448_v18, %v1452_v11 }
 0x22e   : > { %v1439_v41 = vsel %vm3805_vm0, %v1434_v52, %v1438_v28  ;;  %2172 = vmatprep.mubr.bf16.mxu1 %v3008_v6  ;;  %1392 = vst [vmem:[#allocation3 + $0x70] sm:$0xf] %v1384_v21  ;;  %v1310_v28 = vrot.slane %v1308_v19, 4  ;;  %v1313_v29 = vrot.slane %v1311_v16, 5  ;;  %v1319_v30 = vrot.slane %v1317_v20, 5 }
 0x22f   : > { %v1286_v56 = vor.u32 %v1285_v43, %v1282_v42  ;;  %1533 = vst [vmem:[#allocation3 + $0x2c] sm:$0xf] %v1439_v41  ;;  %1393 = vst [vmem:[#allocation3 + $0x88] sm:$0xf] %v1385_v15  ;;  %v1404_v32 = vld [vmem:[#allocation2 + $0x30] sm:$0xf] }
 0x230   : > { %2173 = vmatmul.mubr.bf16.vlgmr.msra.gmra.mrb[16].mxu1 %v3006_v53  ;;  %v3009_v33 = vld [vmem:[#allocation3 + $0x10] ss:$24 sps:$4 sm:$0xff]   ;;  %v1462_v31 = vrot.slane %v1461_v22, 4  ;;  %1534 = vst [vmem:[#allocation3 + $0x44] sm:$0xf] %v1453_v48  ;;  %v1314_v57 = vor.u32 %v1313_v29, %v1310_v28  ;;  %v1324_v35 = vrot.slane %v1322_v25, 4 }
 0x231   : > { %v1287_v2 = vrot.slane %v1286_v56, 4  ;;  %v1327_v5 = vrot.slane %v1325_v26, 5  ;;  %v1331_v37 = vshll.u32 %v1246_v63, 16  ;;  %v1405_v38 = vld [vmem:[#allocation2 + $0x34] sm:$0x1]  ;;  %v1472_v47 = vshll.u32 %v1404_v32, 16 }
 0x232   : > { %v1467_v39 = vsel %vm3805_vm0, %v1462_v31, %v1466_v24  ;;  %v1406_v42 = vld [vmem:[#allocation2 + $0x38] sm:$0xf]  ;;  %v1407_v43 = vld [vmem:[#allocation2 + $0x3c] sm:$0x1]  ;;  %v1315_v50 = vrot.slane %v1314_v57, 4  ;;  %v1478_v54 = vshll.u32 %v1405_v38, 16 }
 0x233   : > { %v1292_v8 = vsel %vm3805_vm0, %v1287_v2, %v1291_v44  ;;  %v1469_v44 = vshrl.u32 %v1404_v32, 16  ;;  %1535 = vst [vmem:[#allocation3 + $0x5c] sm:$0xf] %v1467_v39  ;;  %v1328_v51 = vor.u32 %v1327_v5, %v1324_v35  ;;  %v1333_v52 = vrot.slane %v1331_v37, 5  ;;  %v1225_v36 = vld [vmem:[#allocation2 + $0x38] sm:$0xf] }
 0x234   : > { %1373 = vst [vmem:[#allocation3 + $0x3c] sm:$0xf] %v1292_v8  ;;  %v3016_v56 = vld [vmem:[#allocation3 + $0x38] ss:$24 sps:$4 sm:$0xff]   ;;  %1233 = vst [vmem:[#allocation3 + $0x98] sm:$0xf] %v1225_v36  ;;  %v1320_v27 = vsel %vm3805_vm0, %v1315_v50, %v1319_v30 }
 0x235   : > { %v1471_v58 = vrot.slane %v1469_v44, 4  ;;  %v1329_v59 = vrot.slane %v1328_v51, 4  ;;  %v1474_v60 = vrot.slane %v1472_v47, 5  ;;  %v1226_v41 = vld [vmem:[#allocation2 + $0x40] sm:$0xf]  ;;  %v1480_v61 = vrot.slane %v1478_v54, 5 }
 0x236   : > { %v3011_v34 = vld [vmem:[#allocation3 + $0x14] ss:$24 sps:$4 sm:$0xff]   ;;  %1375 = vst [vmem:[#allocation3 + $0x6c] sm:$0xf] %v1320_v27  ;;  %v1483_v62 = vshrl.u32 %v1406_v42, 16  ;;  %v1486_v0 = vshll.u32 %v1406_v42, 16 }
 0x237   : > { %2237 = vmatprep.mubr.bf16.mxu0 %v3011_v34  ;;  %v1492_v1 = vshll.u32 %v1407_v43, 16  ;;  %1234 = vst [vmem:[#allocation3 + $0xb0] sm:$0xf] %v1226_v41  ;;  %v1247_v40 = vld [vmem:[#allocation2 + $0x38] sm:$0xf]  ;;  %v1334_v2 = vsel %vm3805_vm0, %v1329_v59, %v1333_v52  ;;  %v1475_v3 = vor.u32 %v1474_v60, %v1471_v58 }
 0x238   : > { %2238 = vmatmul.mubr.bf16.vlgmr.msra.gmra.mrb[20].mxu0 %v3009_v33  ;;  %v1248_v46 = vld [vmem:[#allocation2 + $0x3c] sm:$0x1]  ;;  %v1249_v4 = vld [vmem:[#allocation2 + $0x40] sm:$0xf]  ;;  %v1336_v53 = vshrl.u32 %v1247_v40, 16  ;;  %v1485_v6 = vrot.slane %v1483_v62, 4 }
 0x239   : > { %1376 = vst [vmem:[#allocation3 + $0x84] sm:$0xf] %v1334_v2  ;;  %v1488_v7 = vrot.slane %v1486_v0, 5  ;;  %v1494_v8 = vrot.slane %v1492_v1, 5  ;;  %v1250_v9 = vld [vmem:[#allocation2 + $0x44] sm:$0x1] }
 0x23a   : > { %v1339_v11 = vshll.u32 %v1247_v40, 16  ;;  %v1476_v12 = vrot.slane %v1475_v3, 4  ;;  %v1338_v13 = vrot.slane %v1336_v53, 4  ;;  %v1345_v10 = vshll.u32 %v1248_v46, 16  ;;  %v1386_v55 = vld [vmem:[#allocation2 + $0x40] sm:$0xf] }
 0x23b   : > { %v3012_v23 = vld [vmem:[#allocation3 + $0x3c] ss:$24 sps:$4 sm:$0xff]   ;;  %v1350_v14 = vshrl.u32 %v1249_v4, 16  ;;  %v3017_v49 = vld [vmem:[#allocation3 + $0x40] ss:$24 sps:$4 sm:$0xff]   ;;  %v1489_v63 = vor.u32 %v1488_v7, %v1485_v6  ;;  %v1353_v20 = vshll.u32 %v1249_v4, 16 }
 0x23c   : > { %2180 = vmatprep.mubr.bf16.mxu1 %v3012_v23  ;;  %v3014_v17 = vld [vmem:[#allocation3 + $0x44] ss:$24 sps:$4 sm:$0xff]   ;;  %v1341_v18 = vrot.slane %v1339_v11, 5  ;;  %1394 = vst [vmem:[#allocation3 + $0xa0] sm:$0xf] %v1386_v55  ;;  %v1481_v19 = vsel %vm3805_vm0, %v1476_v12, %v1480_v61  ;;  %v1347_v25 = vrot.slane %v1345_v10, 5 }
 0x23d   : > { %2181 = vmatmul.mubr.bf16.gmra.mrb[20].mxu1 %v3016_v56  ;;  %v1352_v16 = vrot.slane %v1350_v14, 4  ;;  %v1387_v21 = vld [vmem:[#allocation2 + $0x48] sm:$0xf]  ;;  %2245 = vmatprep.mubr.bf16.mxu0 %v3014_v17  ;;  %v1490_v22 = vrot.slane %v1489_v63, 4  ;;  %1536 = vst [vmem:[#allocation3 + $0x74] sm:$0xf] %v1481_v19 }
 0x23e   : > { %v1342_v24 = vor.u32 %v1341_v18, %v1338_v13  ;;  %v1359_v26 = vshll.u32 %v1250_v9, 16  ;;  %1395 = vst [vmem:[#allocation3 + $0xb8] sm:$0xf] %v1387_v21  ;;  %v1408_v15 = vld [vmem:[#allocation2 + $0x40] sm:$0xf]  ;;  %v1355_v48 = vrot.slane %v1353_v20, 5 }
 0x23f   : > { %v1409_v28 = vld [vmem:[#allocation2 + $0x44] sm:$0x1]  ;;  %v1410_v29 = vld [vmem:[#allocation2 + $0x48] sm:$0xf]  ;;  %v1495_v30 = vsel %vm3805_vm0, %v1490_v22, %v1494_v8  ;;  %v1411_v34 = vld [vmem:[#allocation2 + $0x4c] sm:$0x1] }
 0x240   : > { %2246 = vmatmul.mubr.bf16.gmra.mrb[24].mxu0 %v3017_v49  ;;  %v1343_v32 = vrot.slane %v1342_v24, 4  ;;  %v1361_v33 = vrot.slane %v1359_v26, 5  ;;  %v1497_v31 = vshrl.u32 %v1408_v15, 16  ;;  %v3018_v57 = vld [vmem:[#allocation3 + $0x6c] ss:$24 sps:$4 sm:$0xff]   ;;  %v1356_v5 = vor.u32 %v1355_v48, %v1352_v16 }
 0x241   : > { %1537 = vst [vmem:[#allocation3 + $0x8c] sm:$0xf] %v1495_v30  ;;  %v3022_v35 = vld [vmem:[#allocation3 + $0x68] ss:$24 sps:$4 sm:$0xff]   ;;  %v1500_v37 = vshll.u32 %v1408_v15, 16  ;;  %v1506_v42 = vshll.u32 %v1409_v28, 16  ;;  %2188 = vmatprep.mubr.bf16.mxu1 %v3018_v57 }
 0x242   : > { %v1348_v38 = vsel %vm3805_vm0, %v1343_v32, %v1347_v25  ;;  %v1499_v39 = vrot.slane %v1497_v31, 4  ;;  %v1511_v43 = vshrl.u32 %v1410_v29, 16  ;;  %v1357_v44 = vrot.slane %v1356_v5, 4  ;;  %v3023_v41 = vld [vmem:[#allocation3 + $0x70] ss:$24 sps:$4 sm:$0xff]  }
 0x243   : > { %1377 = vst [vmem:[#allocation3 + $0x9c] sm:$0xf] %v1348_v38  ;;  %v1502_v47 = vrot.slane %v1500_v37, 5  ;;  %v1514_v50 = vshll.u32 %v1410_v29, 16  ;;  %v1520_v51 = vshll.u32 %v1411_v34, 16  ;;  %v1508_v23 = vrot.slane %v1506_v42, 5 }
 0x244   : > { %v1513_v52 = vrot.slane %v1511_v43, 4  ;;  %v1362_v54 = vsel %vm3805_vm0, %v1357_v44, %v1361_v33  ;;  %v3028_v40 = vld [vmem:[#allocation3 + $0x98] ss:$24 sps:$4 sm:$0xff]  }
 0x245   : > { %2189 = vmatmul.mubr.bf16.gmra.mrb[24].mxu1 %v3022_v35  ;;  %v1503_v36 = vor.u32 %v1502_v47, %v1499_v39  ;;  %v1516_v56 = vrot.slane %v1514_v50, 5  ;;  %1378 = vst [vmem:[#allocation3 + $0xb4] sm:$0xf] %v1362_v54  ;;  %v1522_v59 = vrot.slane %v1520_v51, 5  ;;  %v3029_v3 = vld [vmem:[#allocation3 + $0xa0] ss:$24 sps:$4 sm:$0xff]  }
 0x246   : > { %v3864_v25 = vld [vmem:[%s3946_s4] ss:$0 sm:$0xff] }
 0x247   : > { %v1504_v58 = vrot.slane %v1503_v36, 4  ;;  %v1517_v27 = vor.u32 %v1516_v56, %v1513_v52 }
 0x248   : > { %v3020_v60 = vld [vmem:[#allocation3 + $0x74] ss:$24 sps:$4 sm:$0xff]  }
 0x249   : > { %v1509_v61 = vsel %vm3805_vm0, %v1504_v58, %v1508_v23  ;;  %v1518_v62 = vrot.slane %v1517_v27, 4  ;;  %2253 = vmatprep.mubr.bf16.mxu0 %v3020_v60 }
 0x24a   : > { %1538 = vst [vmem:[#allocation3 + $0xa4] sm:$0xf] %v1509_v61  ;;  %2254 = vmatmul.mubr.bf16.gmra.mrb[28].mxu0 %v3023_v41 }
 0x24b   : > { %v1523_v0 = vsel %vm3805_vm0, %v1518_v62, %v1522_v59 }
 0x24c   : > { %1539 = vst [vmem:[#allocation3 + $0xbc] sm:$0xf] %v1523_v0  ;;  %v3024_v1 = vld [vmem:[#allocation3 + $0x9c] ss:$24 sps:$4 sm:$0xff]  }
 0x24d   : > { %2196 = vmatprep.mubr.bf16.mxu1 %v3024_v1 }
 0x24e   : > { %2197 = vmatmul.mubr.bf16.gmra.mrb[28].mxu1 %v3028_v40 }
 0x253   : > { %v3026_v2 = vld [vmem:[#allocation3 + $0xa4] ss:$24 sps:$4 sm:$0xff]  }
 0x254   : > { %2261 = vmatprep.mubr.bf16.mxu0 %v3026_v2 }
 0x255   : > { %2262 = vmatmul.mubr.bf16.gmra.mrb[32].mxu0 %v3029_v3 }
 0x2e3   : > { %v2691_v46 = vpop.f32.mrb[0].mxu1 }
 0x2e4   : > { %v2692_v4 = vpop.f32.mrb[1].mxu1 }
 0x2e5   : > { %v2693_v53 = vadd.f32 %v2692_v4, %v2691_v46  ;;  %v2694_v6 = vpop.f32.mrb[2].mxu1 }
 0x2e6   : > { %v2695_v7 = vpop.f32.mrb[3].mxu1 }
 0x2e7   : > { %v2696_v8 = vadd.f32 %v2695_v7, %v2694_v6  ;;  %v2110_v48 = vadd.f32 %v2693_v53, %v3864_v25 }
 0x2e9   : > { %v2113_v32 = vadd.f32 %v2696_v8, %v3864_v25 }
 0x2eb   : > { %v2697_v9 = vpop.f32.mrb[4].mxu1 }
 0x2ec   : > { %v2698_v11 = vpop.f32.mrb[5].mxu1 }
 0x2ed   : > { %v2699_v12 = vadd.f32 %v2698_v11, %v2697_v9  ;;  %v2700_v45 = vpop.f32.mrb[6].mxu1 }
 0x2ee   : > { %v2701_v13 = vpop.f32.mrb[7].mxu1 }
 0x2ef   : > { %v2702_v10 = vadd.f32 %v2701_v13, %v2700_v45  ;;  %v2118_v47 = vadd.f32 %v2699_v12, %v3864_v25 }
 0x2f1   : > { %v2121_v23 = vadd.f32 %v2702_v10, %v3864_v25 }
 0x2f3   : > { %v2703_v14 = vpop.f32.mrb[8].mxu1 }
 0x2f4   : > { %v2704_v55 = vpop.f32.mrb[9].mxu1 }
 0x2f5   : > { %v2705_v17 = vadd.f32 %v2704_v55, %v2703_v14  ;;  %v2706_v49 = vpop.f32.mrb[10].mxu1 }
 0x2f6   : > { %v2707_v63 = vpop.f32.mrb[11].mxu1 }
 0x2f7   : > { %v2708_v18 = vadd.f32 %v2707_v63, %v2706_v49  ;;  %v2126_v8 = vadd.f32 %v2705_v17, %v3864_v25 }
 0x2f9   : > { %v2129_v13 = vadd.f32 %v2708_v18, %v3864_v25 }
 0x2fb   : > { %v2709_v19 = vpop.f32.mrb[12].mxu1 }
 0x2fc   : > { %v2710_v16 = vpop.f32.mrb[13].mxu1 }
 0x2fd   : > { %v3857_v20 = vadd.f32 %v2710_v16, %v2709_v19  ;;  %v2712_v21 = vpop.f32.mrb[14].mxu1 }
 0x2fe   : > { %v2713_v22 = vpop.f32.mrb[15].mxu1 }
 0x2ff   : > { %v3859_v24 = vadd.f32 %v2713_v22, %v2712_v21  ;;  %v2134_v18 = vadd.f32 %v3857_v20, %v3864_v25 }
 0x303   : > { %v2731_v26 = vpop.f32.mrb[16].mxu1 }
 0x304   : > { %v2732_v15 = vpop.f32.mrb[17].mxu1 }
 0x305   : > { %v2733_v28 = vadd.f32 %v2732_v15, %v2731_v26  ;;  %v2734_v29 = vpop.f32.mrb[18].mxu1 }
 0x306   : > { %v2735_v30 = vpop.f32.mrb[19].mxu1 }
 0x307   : > { %v2175_v33 = vadd.f32 %v2733_v28, %v2110_v48  ;;  %v2736_v34 = vadd.f32 %v2735_v30, %v2734_v29 }
 0x309   : > { %v2178_v57 = vadd.f32 %v2736_v34, %v2113_v32 }
 0x30b   : > { %v2771_v31 = vpop.f32.mrb[20].mxu0 }
 0x30c   : > { %v2772_v35 = vpop.f32.mrb[21].mxu0 }
 0x30d   : > { %v2773_v5 = vadd.f32 %v2772_v35, %v2771_v31  ;;  %v2774_v37 = vpop.f32.mrb[22].mxu0  ;;  %v2137_v35 = vadd.f32 %v3859_v24, %v3864_v25 }
 0x30e   : > { %v2775_v38 = vpop.f32.mrb[23].mxu0 }
 0x30f   : > { %v2240_v39 = vadd.f32 %v2773_v5, %v2175_v33  ;;  %v2776_v42 = vadd.f32 %v2775_v38, %v2774_v37 }
 0x310   : > { %v2737_v43 = vpop.f32.mrb[20].mxu1 }
 0x311   : > { %v2738_v44 = vpop.f32.mrb[21].mxu1  ;;  %v2270_v50 = vmax.f32 %v2240_v39, 0.0  ;;  %v2243_v51 = vadd.f32 %v2776_v42, %v2178_v57 }
 0x312   : > { %v2739_v52 = vadd.f32 %v2738_v44, %v2737_v43  ;;  %v2740_v54 = vpop.f32.mrb[22].mxu1 }
 0x313   : > { %v2741_v36 = vpop.f32.mrb[23].mxu1  ;;  %v2271_v56 = vmax.f32 %v2243_v51, 0.0  ;;  %v2278_v59 = vmin.f32 %v2270_v50, 6.0  ;;  %v2777_v41 = vpop.f32.mrb[24].mxu0 }
 0x314   : > { %v2183_v58 = vadd.f32 %v2739_v52, %v2118_v47  ;;  %v2742_v27 = vadd.f32 %v2741_v36, %v2740_v54  ;;  %v2778_v62 = vpop.f32.mrb[25].mxu0 }
 0x315   : > { %v2279_v60 = vmin.f32 %v2271_v56, 6.0  ;;  %v2779_v1 = vadd.f32 %v2778_v62, %v2777_v41  ;;  %v2780_v40 = vpop.f32.mrb[26].mxu0 }
 0x316   : > { %v2186_v61 = vadd.f32 %v2742_v27, %v2121_v23  ;;  %v2781_v2 = vpop.f32.mrb[27].mxu0 }
 0x317   : > { %v2607_v0 = vpack.c.bf16 %v2279_v60, %v2278_v59  ;;  %v2248_v3 = vadd.f32 %v2779_v1, %v2183_v58  ;;  %v2782_v46 = vadd.f32 %v2781_v2, %v2780_v40 }
 0x318   : > { %v2743_v4 = vpop.f32.mrb[24].mxu1 }
 0x319   : > { %2608 = vst [vmem:[%s3795_s26] sm:$0xff] %v2607_v0   ;;  %v2272_v53 = vmax.f32 %v2248_v3, 0.0  ;;  %v2251_v6 = vadd.f32 %v2782_v46, %v2186_v61  ;;  %v2744_v7 = vpop.f32.mrb[25].mxu1 }
 0x31a   : > { %v2745_v9 = vadd.f32 %v2744_v7, %v2743_v4  ;;  %v2746_v11 = vpop.f32.mrb[26].mxu1 }
 0x31b   : > { %v2273_v12 = vmax.f32 %v2251_v6, 0.0  ;;  %v2747_v45 = vpop.f32.mrb[27].mxu1  ;;  %v2280_v55 = vmin.f32 %v2272_v53, 6.0 }
 0x31c   : > { %v2191_v10 = vadd.f32 %v2745_v9, %v2126_v8  ;;  %v2748_v14 = vadd.f32 %v2747_v45, %v2746_v11 }
 0x31d   : > { %v2281_v49 = vmin.f32 %v2273_v12, 6.0  ;;  %v2783_v16 = vpop.f32.mrb[28].mxu0 }
 0x31e   : > { %v2194_v63 = vadd.f32 %v2748_v14, %v2129_v13  ;;  %v2784_v21 = vpop.f32.mrb[29].mxu0 }
 0x31f   : > { %v2612_v19 = vpack.c.bf16 %v2281_v49, %v2280_v55  ;;  %v2785_v22 = vadd.f32 %v2784_v21, %v2783_v16  ;;  %v2786_v26 = vpop.f32.mrb[30].mxu0 }
 0x320   : > { %v2787_v15 = vpop.f32.mrb[31].mxu0 }
 0x321   : > { %2626 = vst [vmem:[%s3795_s26 + $0x8] sm:$0xff] %v2612_v19   ;;  %v2256_v48 = vadd.f32 %v2785_v22, %v2191_v10  ;;  %v2788_v17 = vadd.f32 %v2787_v15, %v2786_v26  ;;  %v2749_v28 = vpop.f32.mrb[28].mxu1 }
 0x322   : > { %v2750_v32 = vpop.f32.mrb[29].mxu1 }
 0x323   : > { %v2274_v29 = vmax.f32 %v2256_v48, 0.0  ;;  %v2259_v30 = vadd.f32 %v2788_v17, %v2194_v63  ;;  %v2751_v33 = vadd.f32 %v2750_v32, %v2749_v28  ;;  %v2752_v34 = vpop.f32.mrb[30].mxu1 }
 0x324   : > { %v2753_v57 = vpop.f32.mrb[31].mxu1 }
 0x325   : > { %v2275_v31 = vmax.f32 %v2259_v30, 0.0  ;;  %v2199_v5 = vadd.f32 %v2751_v33, %v2134_v18  ;;  %v2754_v37 = vadd.f32 %v2753_v57, %v2752_v34  ;;  %v2282_v38 = vmin.f32 %v2274_v29, 6.0 }
 0x327   : > { %v2283_v39 = vmin.f32 %v2275_v31, 6.0  ;;  %v2202_v43 = vadd.f32 %v2754_v37, %v2137_v35 }
 0x328   : > { %v2789_v42 = vpop.f32.mrb[32].mxu0 }
 0x329   : > { %v2617_v44 = vpack.c.bf16 %v2283_v39, %v2282_v38  ;;  %v2790_v47 = vpop.f32.mrb[33].mxu0 }
 0x32a   : > { %v2791_v20 = vadd.f32 %v2790_v47, %v2789_v42  ;;  %v2792_v50 = vpop.f32.mrb[34].mxu0 }
 0x32b   : > { %2627 = vst [vmem:[%s3795_s26 + $0x10] sm:$0xff] %v2617_v44   ;;  %v2793_v51 = vpop.f32.mrb[35].mxu0 }
 0x32c   : > { %v2264_v52 = vadd.f32 %v2791_v20, %v2199_v5  ;;  %v2794_v54 = vadd.f32 %v2793_v51, %v2792_v50 }
 0x32e   : > { %v2276_v24 = vmax.f32 %v2264_v52, 0.0  ;;  %v2267_v25 = vadd.f32 %v2794_v54, %v2202_v43 }
 0x330   : > { %v2277_v36 = vmax.f32 %v2267_v25, 0.0  ;;  %v2284_v23 = vmin.f32 %v2276_v24, 6.0 }
 0x332   : > { %v2285_v56 = vmin.f32 %v2277_v36, 6.0 }
 0x334   : > { %v2622_v58 = vpack.c.bf16 %v2285_v56, %v2284_v23 }
 0x336   : > { %2628 = vst [vmem:[%s3795_s26 + $0x18] sm:$0xff] %v2622_v58  }
 0x337   : > { %3159 = shalt.err (!%p3156_p10)
}
 0x338   : > { %s3160_s2 = scalar_lea.hbm %s3887_s18, 512  ;;  %s3164_s9 = scalar_lea.hbm %s3996_s12, 2048 }
 0x339   : > { %p3161_p0 = scmp.ne.s32.totalorder %s3887_s18, %s3160_s2  ;;  %p3165_p12 = scmp.lt.u32.totalorder %s3887_s18, %s3996_s12 }
 0x33a   : > { %p3166_p1 = scmp.lt.u32.totalorder %s3164_s9, %s3160_s2  ;;  %p3168_p9 = scmp.lt.u32.totalorder %s3160_s2, %s3887_s18 }
 0x33b   : > { %p3162_p3 = pnand %p3161_p0, %p3445_p8 }
 0x33c   : > { %p3167_p2 = por %p3166_p1, %p3165_p12 }
 0x33d   : > { %p3163_p7 = pneg %p3162_p3 }
 0x33e   : > { %p3169_p4 = por %p3168_p9, %p3167_p2 }
 0x340   : > { %p3170_p6 = pnand %p3169_p4, %p3163_p7 }
 0x342   : > { %3173 = shalt.err (!%p3170_p6)
}
 0x343   : > { %s3269_s15 = smov 64   ;;  %s3270_s17 = smov 4  }
 0x344   : > { %2815 = dma.vmem_to_hbm [thread:$0]  (%p3445_p8), %s3882_s3, 512, %s3887_s18, %s2303_s7, %s3269_s15, %s3269_s15, %s3270_s17  }
 0x345 PF: > { %s3997_s6 = sld [smem:[#allocation18_spill]]  ;;  %s3998_s8 = sld [smem:[#allocation19_spill]] }
 0x346   : > { %p2840_p11 = scmp.ge.s32.totalorder %s3256_s25, 2 }
 0x34b   : > { %s2333_s13 = sand.u32 1, %s3997_s6   ;;  %p3999_p13 = scmp.ne.s32.totalorder %s3998_s8, 0 }
 0x34c   : > { %s2334_s21 = scalar_lea.sflag [#allocation6], %s2333_s13 }
 0x34d   : > { %p2832_p5 = pnand %p2840_p11, %p3999_p13 }
 0x34f   : > { %3223 = dma.done.wait (!%p2832_p5), %s2334_s21, 512  }
 0x350   : > { %3225 = vsyncadd (!%p2832_p5), %s2334_s21, 4294966784  ;;  %s25_s25 = sadd.s32 1, %s3256_s25   ;;  %s4000_s5 = sld [smem:[#allocation22_spill]] }
 0x351   : > { %p22_p10 = scmp.ge.s32.totalorder %s25_s25, 6   ;;  %s4001_s10 = sld [smem:[#allocation20_spill]] }
 0x352   : > { %s4002_s29 = sld [smem:[#allocation21_spill]]  ;;  %s4003_s18 = smov %s3232_s19 }
 0x353   : > { %s4004_s19 = smov %s3236_s20  ;;  %s4006_s21 = smov %s3248_s23 }
 0x354   : > { %s4007_s22 = smov %s3252_s24  ;;  %24 = sbr.rel (!%p22_p10) target bundleno = 15 (0xf), region = 117 }
 0x356   : > { %s4005_s20 = smov %s4000_s5 }
 0x357   : > { %s4008_s23 = smov %s4001_s10 }
 0x358   : > { %s4009_s24 = smov %s4002_s29 }
 0x35b   :  { %2339 = vsyncpa [#allocation5], 1 }
 0x35c   :  { %2341 = vsyncpa [#allocation5 + $0x1], 1 }
 0x35d   :  { %2342 = vsyncpa [#allocation8], 1 }
 0x35e   :  { %2344 = vsyncpa [#allocation8 + $0x1], 1 }
 0x35f   :  { %2345 = vsyncpa [#allocation11], 1 }
 0x360   :  { %2346 = vsyncpa [#allocation6], 1 }
 0x361   :  { %2348 = vsyncpa [#allocation6 + $0x1], 1 }

</bundles_post_ra>
